<compile_context>
chip_gen: v5e
topology: v5e:2x2
jax: 0.10.0
libtpu: 0.0.40
codegen_flags: <defaults>
</compile_context>

<pallas_src>
import functools

import jax
import jax.numpy as jnp
import numpy as np
from jax.experimental import pallas as pl
from jax.experimental.pallas import tpu as pltpu


# ----------------------------- helpers (glue) -------------------------------

def get_relative_position_index(win_h: int, win_w: int) -> jnp.ndarray:
    """Same semantics as the PyTorch helper: (N, N) int32 index map."""
    coords = jnp.stack(
        jnp.meshgrid(jnp.arange(win_h), jnp.arange(win_w), indexing="ij")
    )  # (2, wh, ww)
    coords_flatten = coords.reshape(2, -1)                         # (2, N)
    rel = coords_flatten[:, :, None] - coords_flatten[:, None, :]  # (2, N, N)
    rel = rel.transpose(1, 2, 0)                                   # (N, N, 2)
    rel = rel.at[:, :, 0].add(win_h - 1)
    rel = rel.at[:, :, 1].add(win_w - 1)
    rel = rel.at[:, :, 0].multiply(2 * win_w - 1)
    return rel.sum(-1).astype(jnp.int32)                           # (N, N)


def _vmem_capacity_bytes(default=64 * 1024 * 1024):
    """Best-effort VMEM capacity query; conservative default (v7x-sized)."""
    try:
        info = pltpu.get_tpu_info()
    except Exception:            # query is only a sizing hint; never fatal
        return default
    return int(getattr(info, "vmem_capacity_bytes", default))


def _pick_windows_per_block(num_windows, n_tokens, channels, attn_dim, n_heads,
                            in_itemsize, out_itemsize, budget_bytes,
                            target_rows=128):
    """Pick WB | num_windows: smallest WB giving >= target_rows rows per block,
    subject to a VMEM budget that counts x/out (double-buffered), the f32
    qkv / score / prob / ctx intermediates and the block-diagonal bias slab."""
    divisors = [d for d in range(1, num_windows + 1)
                if num_windows % d == 0 and (d * n_tokens) % 8 == 0]
    if not divisors:
        return num_windows            # single full-array block (no (8,128) req)

    def block_bytes(d):
        rows = d * n_tokens
        b = 2 * rows * channels * in_itemsize              # x slab, 2 buffers
        b += 2 * rows * channels * out_itemsize            # out slab, 2 buffers
        b += rows * 3 * attn_dim * 4                       # qkv f32
        b += 2 * rows * rows * 4                           # score + prob f32
        b += rows * attn_dim * (4 + 2)                     # ctx f32 + ctx_all bf16
        b += 2 * n_heads * rows * rows * 4                 # block-diag bias slab
        b += 2 * (channels * 3 * attn_dim + attn_dim * channels) * 2   # weights
        return b

    feasible = [d for d in divisors if block_bytes(d) <= budget_bytes]
    if not feasible:
        return divisors[0]
    for d in feasible:                  # smallest divisor with enough rows
        if d * n_tokens >= target_rows:
            return d
    return feasible[-1]


# ------------------------------ Pallas kernel --------------------------------

def _window_attention_kernel(
    x_ref,       # (rows, C)            bf16  input rows for WB windows
    wqkv_ref,    # (C, 3*attn_dim)      bf16  fused QKV weights (q scale folded)
    bqkv_ref,    # (1, 3*attn_dim)      f32   fused QKV bias (q scale folded)
    bias_ref,    # (H, rows, rows)      f32   tiled rel-pos bias + block-diag mask
    wproj_ref,   # (attn_dim, C)        bf16  output projection
    bproj_ref,   # (1, C)               f32
    o_ref,       # (rows, C)
    *,
    n_heads: int,
    head_dim: int,
    compute_dtype,
):
    attn_dim = n_heads * head_dim
    x = x_ref[...].astype(compute_dtype)                       # (rows, C)

    # Fused QKV projection: one lane-dense MXU matmul, f32 accumulation.
    qkv = jnp.dot(x, wqkv_ref[...],
                  preferred_element_type=jnp.float32) + bqkv_ref[...]

    # TODO(synk): for large head counts (H >= ~8) switch this static unroll to
    # a lax.fori_loop with a (rows, attn_dim) ctx carry to bound live ranges.
    ctx_heads = []
    for h in range(n_heads):
        q = qkv[:, h * head_dim:(h + 1) * head_dim].astype(compute_dtype)
        k = qkv[:, attn_dim + h * head_dim:
                   attn_dim + (h + 1) * head_dim].astype(compute_dtype)
        v = qkv[:, 2 * attn_dim + h * head_dim:
                   2 * attn_dim + (h + 1) * head_dim].astype(compute_dtype)

        # Block-diagonal whole-slab attention: one (rows, rows) score matmul;
        # the additive bias is the tiled relative-position bias on diagonal
        # N x N blocks and -1e9 off the diagonal (no cross-window attention).
        s = jnp.einsum("nd,md->nm", q, k,
                       preferred_element_type=jnp.float32)      # (rows, rows)
        s = s + bias_ref[h]

        # Numerically stable softmax in f32; EUP approximate reciprocal.
        s = s - jnp.max(s, axis=-1, keepdims=True)
        p = jnp.exp(s)
        p = p * pl.reciprocal(jnp.sum(p, axis=-1, keepdims=True), approx=True)

        ctx = jnp.dot(p.astype(compute_dtype), v,
                      preferred_element_type=jnp.float32)       # (rows, hd)
        ctx_heads.append(ctx.astype(compute_dtype))

    # Fused output projection: lane-concat the heads once, one MXU matmul.
    ctx_all = jnp.concatenate(ctx_heads, axis=-1)               # (rows, attn_dim)
    out = jnp.dot(ctx_all, wproj_ref[...],
                  preferred_element_type=jnp.float32) + bproj_ref[...]
    # TODO(synk): C < 128 means masked vst partial stores; accepted here since
    # an in-kernel reshape to a 128-lane slab would add an XLU relayout.
    o_ref[...] = out.astype(o_ref.dtype)


# ------------------------------ wrapper (glue) --------------------------------

def window_attention(x, wqkv, bqkv, rel_pos_bias, wproj, bproj, *,
                     n_heads: int, head_dim: int,
                     compute_dtype=jnp.bfloat16,
                     windows_per_block=None):
    """x: (B_, N, C) with B_ = num_windows * batch.  Returns (B_, N, C).

    wqkv: (C, 3*attn_dim), bqkv: (1, 3*attn_dim), rel_pos_bias: (H, N, N),
    wproj: (attn_dim, C), bproj: (1, C).  mask=None path only.
    """
    B_, N, C = x.shape
    attn_dim = n_heads * head_dim
    assert wqkv.shape == (C, 3 * attn_dim)
    assert bqkv.shape == (1, 3 * attn_dim)
    assert rel_pos_bias.shape == (n_heads, N, N)
    assert wproj.shape == (attn_dim, C)
    assert bproj.shape == (1, C)

    # Generation-aware VMEM policy (v7x: 64 MiB/TC, v5e/v6e: 128 MiB).
    vmem_cap = _vmem_capacity_bytes()
    vmem_limit = min(96 * 1024 * 1024, (3 * vmem_cap) // 4)
    budget = (3 * vmem_limit) // 4

    wb = windows_per_block or _pick_windows_per_block(
        B_, N, C, attn_dim, n_heads,
        in_itemsize=jnp.dtype(compute_dtype).itemsize,
        out_itemsize=jnp.dtype(x.dtype).itemsize,
        budget_bytes=budget)
    assert B_ % wb == 0
    rows = wb * N
    grid = (B_ // wb,)

    # ---- host-side weight prep (pure glue, done once per call) ----
    # Spec as written: score = q @ k.T / self.scale with scale = hd**-0.5,
    # i.e. logits are multiplied by sqrt(hd).  Folded into Wq / bq host-side.
    scale_fold = float(head_dim) ** 0.5
    wqkv_f = wqkv.astype(jnp.float32).at[:, :attn_dim].multiply(scale_fold)
    bqkv_f = bqkv.astype(jnp.float32).at[:, :attn_dim].multiply(scale_fold)
    wqkv_c = wqkv_f.astype(compute_dtype)        # fused, lane-dense, bf16
    wproj_c = wproj.astype(compute_dtype)
    bproj_f = bproj.astype(jnp.float32)

    # Block-diagonal additive bias slab: tiled rel-pos bias on the diagonal
    # N x N blocks, -1e9 off the diagonal.
    rpb = rel_pos_bias.astype(jnp.float32)                            # (H, N, N)
    block_diag = jnp.kron(jnp.eye(wb, dtype=jnp.float32),
                          jnp.ones((N, N), jnp.float32))              # (rows, rows)
    bias_slab = jnp.tile(rpb, (1, wb, wb)) + ((block_diag - 1.0) * 1e9)[None]

    # Lane-dense 2-D input slab, cast to bf16 at the boundary (halves DMA).
    x2 = x.reshape(B_ * N, C).astype(compute_dtype)

    kernel = functools.partial(
        _window_attention_kernel,
        n_heads=n_heads, head_dim=head_dim, compute_dtype=compute_dtype)

    grid_spec = pltpu.PrefetchScalarGridSpec(
        num_scalar_prefetch=0,
        grid=grid,
        in_specs=[
            pl.BlockSpec((rows, C), lambda g: (g, 0)),                # x row slab
            pl.BlockSpec((C, 3 * attn_dim), lambda g: (0, 0)),        # Wqkv
            pl.BlockSpec((1, 3 * attn_dim), lambda g: (0, 0)),        # bqkv
            pl.BlockSpec((n_heads, rows, rows), lambda g: (0, 0, 0)), # bias slab
            pl.BlockSpec((attn_dim, C), lambda g: (0, 0)),            # Wproj
            pl.BlockSpec((1, C), lambda g: (0, 0)),                   # bproj
        ],
        out_specs=pl.BlockSpec((rows, C), lambda g: (g, 0)),
    )

    out2 = pl.pallas_call(
        kernel,
        out_shape=jax.ShapeDtypeStruct((B_ * N, C), x.dtype),
        grid_spec=grid_spec,
        compiler_params=pltpu.CompilerParams(
            dimension_semantics=("parallel",),   # megacore-shardable grid
            vmem_limit_bytes=vmem_limit,
        ),
    )(x2, wqkv_c, bqkv_f, bias_slab, wproj_c, bproj_f)

    return out2.reshape(B_, N, C)


# ------------------------------ reference (JAX) --------------------------------

def window_attention_ref(x, wqkv, bqkv, rel_pos_bias, wproj, bproj, *,
                         n_heads: int, head_dim: int,
                         compute_dtype=jnp.bfloat16):
    """Pure-JAX reference mirroring the module math (bf16 matmuls, f32 accum)."""
    B_, N, C = x.shape
    attn_dim = n_heads * head_dim
    inv_scale = float(head_dim) ** 0.5   # spec: score = q @ k.T / (hd ** -0.5)
    cd = compute_dtype

    def mm(a, b):
        return jnp.einsum("...k,km->...m", a.astype(cd), b.astype(cd),
                          preferred_element_type=jnp.float32)

    q = mm(x, wqkv[:, 0 * attn_dim:1 * attn_dim]) + bqkv[:, 0 * attn_dim:1 * attn_dim]
    k = mm(x, wqkv[:, 1 * attn_dim:2 * attn_dim]) + bqkv[:, 1 * attn_dim:2 * attn_dim]
    v = mm(x, wqkv[:, 2 * attn_dim:3 * attn_dim]) + bqkv[:, 2 * attn_dim:3 * attn_dim]
    q = q * inv_scale

    def split_heads(t):   # (B_, N, attn_dim) -> (B_, H, N, hd)
        return t.reshape(B_, N, n_heads, head_dim).transpose(0, 2, 1, 3)

    q, k, v = split_heads(q), split_heads(k), split_heads(v)
    s = jnp.einsum("bhnd,bhmd->bhnm", q.astype(cd), k.astype(cd),
                   preferred_element_type=jnp.float32)
    s = s + rel_pos_bias[None]
    attn = jax.nn.softmax(s, axis=-1)
    out = jnp.einsum("bhnm,bhmd->bhnd", attn.astype(cd), v.astype(cd),
                     preferred_element_type=jnp.float32)
    out = out.transpose(0, 2, 1, 3).reshape(B_, N, attn_dim)
    return mm(out, wproj) + bproj


# ----------------------------------- main --------------------------------------

if __name__ == "__main__":
    dim = 32
    n_heads = 4
    head_dim = dim // n_heads            # 8
    attn_dim = n_heads * head_dim        # 32
    win_h, win_w = 4, 4
    N = win_h * win_w                    # 16 tokens per window
    batch = 4
    num_windows = 4
    B_ = batch * num_windows             # 16 windows -> 128-row slabs, 2 steps

    key = jax.random.PRNGKey(0)
    k_x, k_tbl, k_wqkv, k_bqkv, k_wproj, k_bproj = jax.random.split(key, 6)

    x = jax.random.normal(k_x, (B_, N, dim), dtype=jnp.float32)
    rel_pos_bias_table = 0.02 * jax.random.normal(
        k_tbl, ((2 * win_h - 1) * (2 * win_w - 1), n_heads), dtype=jnp.float32)
    wqkv = 0.02 * jax.random.normal(k_wqkv, (dim, 3 * attn_dim), dtype=jnp.float32)
    bqkv = 0.02 * jax.random.normal(k_bqkv, (1, 3 * attn_dim), dtype=jnp.float32)
    wproj = 0.02 * jax.random.normal(k_wproj, (attn_dim, dim), dtype=jnp.float32)
    bproj = 0.02 * jax.random.normal(k_bproj, (1, dim), dtype=jnp.float32)

    # Gather relative position bias once (glue, outside the kernel):
    # table[index.flatten()] -> (N, N, H) -> (H, N, N)
    rel_idx = get_relative_position_index(win_h, win_w)                    # (N, N)
    rel_pos_bias = rel_pos_bias_table[rel_idx.reshape(-1)]                 # (N*N, H)
    rel_pos_bias = rel_pos_bias.reshape(N, N, n_heads).transpose(2, 0, 1)  # (H, N, N)

    out = window_attention(
        x, wqkv, bqkv, rel_pos_bias, wproj, bproj,
        n_heads=n_heads, head_dim=head_dim,
    )
    out = jax.block_until_ready(out)

    ref = window_attention_ref(
        x, wqkv, bqkv, rel_pos_bias, wproj, bproj,
        n_heads=n_heads, head_dim=head_dim, compute_dtype=jnp.bfloat16,
    )
    np.testing.assert_allclose(np.asarray(out), np.asarray(ref),
                               rtol=2e-2, atol=1e-3)

    # TODO(synk): optional attention `mask` argument (shifted-window path) is
    # not implemented; the mask=None path of the module is reproduced exactly.
    print("KERNEL_OK")
</pallas_src>

<mosaic_0001>
module attributes {stable_mosaic.version = 11 : i64} {
  func.func @_window_attention_kernel(%arg0: i32, %arg1: memref<128x32xbf16, #tpu.memory_space<vmem>>, %arg2: memref<32x96xbf16, #tpu.memory_space<vmem>>, %arg3: memref<1x96xf32, #tpu.memory_space<vmem>>, %arg4: memref<4x128x128xf32, #tpu.memory_space<vmem>>, %arg5: memref<32x32xbf16, #tpu.memory_space<vmem>>, %arg6: memref<1x32xf32, #tpu.memory_space<vmem>>, %arg7: memref<128x32xf32, #tpu.memory_space<vmem>>) attributes {dimension_semantics = [#tpu.dimension_semantics<parallel>], iteration_bounds = array<i64: 2>, scalar_prefetch = 0 : i64, scratch_operands = 0 : i64, tpu.core_type = #tpu.core_type<tc>, window_params = [{transform_indices = @transform_0, window_bounds = array<i64: 128, 32>}, {pipeline_mode = #tpu.pipeline_mode<synchronous>, transform_indices = @transform_1, window_bounds = array<i64: 32, 96>}, {pipeline_mode = #tpu.pipeline_mode<synchronous>, transform_indices = @transform_2, window_bounds = array<i64: 1, 96>}, {pipeline_mode = #tpu.pipeline_mode<synchronous>, transform_indices = @transform_3, window_bounds = array<i64: 4, 128, 128>}, {pipeline_mode = #tpu.pipeline_mode<synchronous>, transform_indices = @transform_4, window_bounds = array<i64: 32, 32>}, {pipeline_mode = #tpu.pipeline_mode<synchronous>, transform_indices = @transform_5, window_bounds = array<i64: 1, 32>}, {transform_indices = @transform_6, window_bounds = array<i64: 128, 32>}]} {
    %c0 = arith.constant 0 : index
    %c0_0 = arith.constant 0 : index
    %0 = vector.load %arg1[%c0, %c0_0] : memref<128x32xbf16, #tpu.memory_space<vmem>>, vector<128x32xbf16>
    %c0_1 = arith.constant 0 : index
    %c0_2 = arith.constant 0 : index
    %1 = vector.load %arg2[%c0_1, %c0_2] : memref<32x96xbf16, #tpu.memory_space<vmem>>, vector<32x96xbf16>
    %cst = arith.constant dense<0.000000e+00> : vector<128x96xf32>
    %2 = tpu.matmul %0, %1, %cst {dimension_numbers = #tpu.dot_dimension_numbers<[1], [0], [0], [1], [0, 0, 1, 1], [], []>} : vector<128x32xbf16>, vector<32x96xbf16>, vector<128x96xf32> -> vector<128x96xf32>
    %c0_3 = arith.constant 0 : index
    %c0_4 = arith.constant 0 : index
    %3 = vector.load %arg3[%c0_3, %c0_4] : memref<1x96xf32, #tpu.memory_space<vmem>>, vector<1x96xf32>
    %4 = vector.broadcast %3 : vector<1x96xf32> to vector<128x96xf32>
    %5 = arith.addf %2, %4 : vector<128x96xf32>
    %6 = vector.extract_strided_slice %5 {offsets = [0, 0], sizes = [128, 8], strides = [1, 1]} : vector<128x96xf32> to vector<128x8xf32>
    %7 = arith.truncf %6 : vector<128x8xf32> to vector<128x8xbf16>
    %8 = vector.extract_strided_slice %5 {offsets = [0, 32], sizes = [128, 8], strides = [1, 1]} : vector<128x96xf32> to vector<128x8xf32>
    %9 = arith.truncf %8 : vector<128x8xf32> to vector<128x8xbf16>
    %10 = vector.extract_strided_slice %5 {offsets = [0, 64], sizes = [128, 8], strides = [1, 1]} : vector<128x96xf32> to vector<128x8xf32>
    %11 = arith.truncf %10 : vector<128x8xf32> to vector<128x8xbf16>
    "tpu.trace_start"() <{level = 10 : i32, message = "nd,md->nm"}> : () -> ()
    %cst_5 = arith.constant dense<0.000000e+00> : vector<128x128xf32>
    %12 = tpu.matmul %7, %9, %cst_5 {dimension_numbers = #tpu.dot_dimension_numbers<[1], [1], [0], [0], [0, 0, 1, 0], [], []>} : vector<128x8xbf16>, vector<128x8xbf16>, vector<128x128xf32> -> vector<128x128xf32>
    "tpu.trace_stop"() : () -> ()
    %c0_6 = arith.constant 0 : index
    %c0_7 = arith.constant 0 : index
    %c0_8 = arith.constant 0 : index
    %13 = vector.load %arg4[%c0_6, %c0_7, %c0_8] : memref<4x128x128xf32, #tpu.memory_space<vmem>>, vector<1x128x128xf32>
    %14 = vector.shape_cast %13 : vector<1x128x128xf32> to vector<128x128xf32>
    %15 = arith.addf %12, %14 : vector<128x128xf32>
    %cst_9 = arith.constant dense<0xFF800000> : vector<128xf32>
    %16 = vector.multi_reduction <maximumf>, %15, %cst_9 [1] : vector<128x128xf32> to vector<128xf32>
    %17 = vector.shape_cast %16 : vector<128xf32> to vector<128x1xf32>
    %18 = vector.broadcast %17 : vector<128x1xf32> to vector<128x128xf32>
    %19 = arith.subf %15, %18 : vector<128x128xf32>
    %20 = math.exp %19 : vector<128x128xf32>
    %cst_10 = arith.constant dense<0.000000e+00> : vector<128xf32>
    %21 = vector.multi_reduction <add>, %20, %cst_10 [1] : vector<128x128xf32> to vector<128xf32>
    %22 = vector.shape_cast %21 : vector<128xf32> to vector<128x1xf32>
    %23 = tpu.reciprocal %22 {approx = true} : vector<128x1xf32> -> vector<128x1xf32>
    %24 = vector.broadcast %23 : vector<128x1xf32> to vector<128x128xf32>
    %25 = arith.mulf %20, %24 : vector<128x128xf32>
    %26 = arith.truncf %25 : vector<128x128xf32> to vector<128x128xbf16>
    %cst_11 = arith.constant dense<0.000000e+00> : vector<128x8xf32>
    %27 = tpu.matmul %26, %11, %cst_11 {dimension_numbers = #tpu.dot_dimension_numbers<[1], [0], [0], [1], [0, 0, 1, 1], [], []>} : vector<128x128xbf16>, vector<128x8xbf16>, vector<128x8xf32> -> vector<128x8xf32>
    %28 = arith.truncf %27 : vector<128x8xf32> to vector<128x8xbf16>
    %29 = vector.extract_strided_slice %5 {offsets = [0, 8], sizes = [128, 8], strides = [1, 1]} : vector<128x96xf32> to vector<128x8xf32>
    %30 = arith.truncf %29 : vector<128x8xf32> to vector<128x8xbf16>
    %31 = vector.extract_strided_slice %5 {offsets = [0, 40], sizes = [128, 8], strides = [1, 1]} : vector<128x96xf32> to vector<128x8xf32>
    %32 = arith.truncf %31 : vector<128x8xf32> to vector<128x8xbf16>
    %33 = vector.extract_strided_slice %5 {offsets = [0, 72], sizes = [128, 8], strides = [1, 1]} : vector<128x96xf32> to vector<128x8xf32>
    %34 = arith.truncf %33 : vector<128x8xf32> to vector<128x8xbf16>
    "tpu.trace_start"() <{level = 10 : i32, message = "nd,md->nm"}> : () -> ()
    %cst_12 = arith.constant dense<0.000000e+00> : vector<128x128xf32>
    %35 = tpu.matmul %30, %32, %cst_12 {dimension_numbers = #tpu.dot_dimension_numbers<[1], [1], [0], [0], [0, 0, 1, 0], [], []>} : vector<128x8xbf16>, vector<128x8xbf16>, vector<128x128xf32> -> vector<128x128xf32>
    "tpu.trace_stop"() : () -> ()
    %c1 = arith.constant 1 : index
    %c0_13 = arith.constant 0 : index
    %c0_14 = arith.constant 0 : index
    %36 = vector.load %arg4[%c1, %c0_13, %c0_14] : memref<4x128x128xf32, #tpu.memory_space<vmem>>, vector<1x128x128xf32>
    %37 = vector.shape_cast %36 : vector<1x128x128xf32> to vector<128x128xf32>
    %38 = arith.addf %35, %37 : vector<128x128xf32>
    %cst_15 = arith.constant dense<0xFF800000> : vector<128xf32>
    %39 = vector.multi_reduction <maximumf>, %38, %cst_15 [1] : vector<128x128xf32> to vector<128xf32>
    %40 = vector.shape_cast %39 : vector<128xf32> to vector<128x1xf32>
    %41 = vector.broadcast %40 : vector<128x1xf32> to vector<128x128xf32>
    %42 = arith.subf %38, %41 : vector<128x128xf32>
    %43 = math.exp %42 : vector<128x128xf32>
    %cst_16 = arith.constant dense<0.000000e+00> : vector<128xf32>
    %44 = vector.multi_reduction <add>, %43, %cst_16 [1] : vector<128x128xf32> to vector<128xf32>
    %45 = vector.shape_cast %44 : vector<128xf32> to vector<128x1xf32>
    %46 = tpu.reciprocal %45 {approx = true} : vector<128x1xf32> -> vector<128x1xf32>
    %47 = vector.broadcast %46 : vector<128x1xf32> to vector<128x128xf32>
    %48 = arith.mulf %43, %47 : vector<128x128xf32>
    %49 = arith.truncf %48 : vector<128x128xf32> to vector<128x128xbf16>
    %cst_17 = arith.constant dense<0.000000e+00> : vector<128x8xf32>
    %50 = tpu.matmul %49, %34, %cst_17 {dimension_numbers = #tpu.dot_dimension_numbers<[1], [0], [0], [1], [0, 0, 1, 1], [], []>} : vector<128x128xbf16>, vector<128x8xbf16>, vector<128x8xf32> -> vector<128x8xf32>
    %51 = arith.truncf %50 : vector<128x8xf32> to vector<128x8xbf16>
    %52 = vector.extract_strided_slice %5 {offsets = [0, 16], sizes = [128, 8], strides = [1, 1]} : vector<128x96xf32> to vector<128x8xf32>
    %53 = arith.truncf %52 : vector<128x8xf32> to vector<128x8xbf16>
    %54 = vector.extract_strided_slice %5 {offsets = [0, 48], sizes = [128, 8], strides = [1, 1]} : vector<128x96xf32> to vector<128x8xf32>
    %55 = arith.truncf %54 : vector<128x8xf32> to vector<128x8xbf16>
    %56 = vector.extract_strided_slice %5 {offsets = [0, 80], sizes = [128, 8], strides = [1, 1]} : vector<128x96xf32> to vector<128x8xf32>
    %57 = arith.truncf %56 : vector<128x8xf32> to vector<128x8xbf16>
    "tpu.trace_start"() <{level = 10 : i32, message = "nd,md->nm"}> : () -> ()
    %cst_18 = arith.constant dense<0.000000e+00> : vector<128x128xf32>
    %58 = tpu.matmul %53, %55, %cst_18 {dimension_numbers = #tpu.dot_dimension_numbers<[1], [1], [0], [0], [0, 0, 1, 0], [], []>} : vector<128x8xbf16>, vector<128x8xbf16>, vector<128x128xf32> -> vector<128x128xf32>
    "tpu.trace_stop"() : () -> ()
    %c2 = arith.constant 2 : index
    %c0_19 = arith.constant 0 : index
    %c0_20 = arith.constant 0 : index
    %59 = vector.load %arg4[%c2, %c0_19, %c0_20] : memref<4x128x128xf32, #tpu.memory_space<vmem>>, vector<1x128x128xf32>
    %60 = vector.shape_cast %59 : vector<1x128x128xf32> to vector<128x128xf32>
    %61 = arith.addf %58, %60 : vector<128x128xf32>
    %cst_21 = arith.constant dense<0xFF800000> : vector<128xf32>
    %62 = vector.multi_reduction <maximumf>, %61, %cst_21 [1] : vector<128x128xf32> to vector<128xf32>
    %63 = vector.shape_cast %62 : vector<128xf32> to vector<128x1xf32>
    %64 = vector.broadcast %63 : vector<128x1xf32> to vector<128x128xf32>
    %65 = arith.subf %61, %64 : vector<128x128xf32>
    %66 = math.exp %65 : vector<128x128xf32>
    %cst_22 = arith.constant dense<0.000000e+00> : vector<128xf32>
    %67 = vector.multi_reduction <add>, %66, %cst_22 [1] : vector<128x128xf32> to vector<128xf32>
    %68 = vector.shape_cast %67 : vector<128xf32> to vector<128x1xf32>
    %69 = tpu.reciprocal %68 {approx = true} : vector<128x1xf32> -> vector<128x1xf32>
    %70 = vector.broadcast %69 : vector<128x1xf32> to vector<128x128xf32>
    %71 = arith.mulf %66, %70 : vector<128x128xf32>
    %72 = arith.truncf %71 : vector<128x128xf32> to vector<128x128xbf16>
    %cst_23 = arith.constant dense<0.000000e+00> : vector<128x8xf32>
    %73 = tpu.matmul %72, %57, %cst_23 {dimension_numbers = #tpu.dot_dimension_numbers<[1], [0], [0], [1], [0, 0, 1, 1], [], []>} : vector<128x128xbf16>, vector<128x8xbf16>, vector<128x8xf32> -> vector<128x8xf32>
    %74 = arith.truncf %73 : vector<128x8xf32> to vector<128x8xbf16>
    %75 = vector.extract_strided_slice %5 {offsets = [0, 24], sizes = [128, 8], strides = [1, 1]} : vector<128x96xf32> to vector<128x8xf32>
    %76 = arith.truncf %75 : vector<128x8xf32> to vector<128x8xbf16>
    %77 = vector.extract_strided_slice %5 {offsets = [0, 56], sizes = [128, 8], strides = [1, 1]} : vector<128x96xf32> to vector<128x8xf32>
    %78 = arith.truncf %77 : vector<128x8xf32> to vector<128x8xbf16>
    %79 = vector.extract_strided_slice %5 {offsets = [0, 88], sizes = [128, 8], strides = [1, 1]} : vector<128x96xf32> to vector<128x8xf32>
    %80 = arith.truncf %79 : vector<128x8xf32> to vector<128x8xbf16>
    "tpu.trace_start"() <{level = 10 : i32, message = "nd,md->nm"}> : () -> ()
    %cst_24 = arith.constant dense<0.000000e+00> : vector<128x128xf32>
    %81 = tpu.matmul %76, %78, %cst_24 {dimension_numbers = #tpu.dot_dimension_numbers<[1], [1], [0], [0], [0, 0, 1, 0], [], []>} : vector<128x8xbf16>, vector<128x8xbf16>, vector<128x128xf32> -> vector<128x128xf32>
    "tpu.trace_stop"() : () -> ()
    %c3 = arith.constant 3 : index
    %c0_25 = arith.constant 0 : index
    %c0_26 = arith.constant 0 : index
    %82 = vector.load %arg4[%c3, %c0_25, %c0_26] : memref<4x128x128xf32, #tpu.memory_space<vmem>>, vector<1x128x128xf32>
    %83 = vector.shape_cast %82 : vector<1x128x128xf32> to vector<128x128xf32>
    %84 = arith.addf %81, %83 : vector<128x128xf32>
    %cst_27 = arith.constant dense<0xFF800000> : vector<128xf32>
    %85 = vector.multi_reduction <maximumf>, %84, %cst_27 [1] : vector<128x128xf32> to vector<128xf32>
    %86 = vector.shape_cast %85 : vector<128xf32> to vector<128x1xf32>
    %87 = vector.broadcast %86 : vector<128x1xf32> to vector<128x128xf32>
    %88 = arith.subf %84, %87 : vector<128x128xf32>
    %89 = math.exp %88 : vector<128x128xf32>
    %cst_28 = arith.constant dense<0.000000e+00> : vector<128xf32>
    %90 = vector.multi_reduction <add>, %89, %cst_28 [1] : vector<128x128xf32> to vector<128xf32>
    %91 = vector.shape_cast %90 : vector<128xf32> to vector<128x1xf32>
    %92 = tpu.reciprocal %91 {approx = true} : vector<128x1xf32> -> vector<128x1xf32>
    %93 = vector.broadcast %92 : vector<128x1xf32> to vector<128x128xf32>
    %94 = arith.mulf %89, %93 : vector<128x128xf32>
    %95 = arith.truncf %94 : vector<128x128xf32> to vector<128x128xbf16>
    %cst_29 = arith.constant dense<0.000000e+00> : vector<128x8xf32>
    %96 = tpu.matmul %95, %80, %cst_29 {dimension_numbers = #tpu.dot_dimension_numbers<[1], [0], [0], [1], [0, 0, 1, 1], [], []>} : vector<128x128xbf16>, vector<128x8xbf16>, vector<128x8xf32> -> vector<128x8xf32>
    %97 = arith.truncf %96 : vector<128x8xf32> to vector<128x8xbf16>
    %98 = tpu.concatenate %28, %51, %74, %97 in 1 : vector<128x8xbf16>, vector<128x8xbf16>, vector<128x8xbf16>, vector<128x8xbf16> -> vector<128x32xbf16>
    %c0_30 = arith.constant 0 : index
    %c0_31 = arith.constant 0 : index
    %99 = vector.load %arg5[%c0_30, %c0_31] : memref<32x32xbf16, #tpu.memory_space<vmem>>, vector<32x32xbf16>
    %cst_32 = arith.constant dense<0.000000e+00> : vector<128x32xf32>
    %100 = tpu.matmul %98, %99, %cst_32 {dimension_numbers = #tpu.dot_dimension_numbers<[1], [0], [0], [1], [0, 0, 1, 1], [], []>} : vector<128x32xbf16>, vector<32x32xbf16>, vector<128x32xf32> -> vector<128x32xf32>
    %c0_33 = arith.constant 0 : index
    %c0_34 = arith.constant 0 : index
    %101 = vector.load %arg6[%c0_33, %c0_34] : memref<1x32xf32, #tpu.memory_space<vmem>>, vector<1x32xf32>
    %102 = vector.broadcast %101 : vector<1x32xf32> to vector<128x32xf32>
    %103 = arith.addf %100, %102 : vector<128x32xf32>
    %c0_35 = arith.constant 0 : index
    %c0_36 = arith.constant 0 : index
    %104 = vector.load %arg7[%c0_35, %c0_36] : memref<128x32xf32, #tpu.memory_space<vmem>>, vector<128x32xf32>
    tpu.vector_store %arg7[%c0_35, %c0_36], %103 {strides = array<i32>} : memref<128x32xf32, #tpu.memory_space<vmem>>, vector<128x32xf32>,
    return
  }
  func.func @transform_0(%arg0: i32) -> (i32, i32) {
    %c0_i32 = arith.constant 0 : i32
    %c0_i32_0 = arith.constant 0 : i32
    return %arg0, %c0_i32 : i32, i32
  }
  func.func @transform_1(%arg0: i32) -> (i32, i32) {
    %c0_i32 = arith.constant 0 : i32
    %c0_i32_0 = arith.constant 0 : i32
    %c0_i32_1 = arith.constant 0 : i32
    return %c0_i32, %c0_i32_0 : i32, i32
  }
  func.func @transform_2(%arg0: i32) -> (i32, i32) {
    %c0_i32 = arith.constant 0 : i32
    %c0_i32_0 = arith.constant 0 : i32
    %c0_i32_1 = arith.constant 0 : i32
    return %c0_i32, %c0_i32_0 : i32, i32
  }
  func.func @transform_3(%arg0: i32) -> (i32, i32, i32) {
    %c0_i32 = arith.constant 0 : i32
    %c0_i32_0 = arith.constant 0 : i32
    %c0_i32_1 = arith.constant 0 : i32
    %c0_i32_2 = arith.constant 0 : i32
    return %c0_i32, %c0_i32_0, %c0_i32_1 : i32, i32, i32
  }
  func.func @transform_4(%arg0: i32) -> (i32, i32) {
    %c0_i32 = arith.constant 0 : i32
    %c0_i32_0 = arith.constant 0 : i32
    %c0_i32_1 = arith.constant 0 : i32
    return %c0_i32, %c0_i32_0 : i32, i32
  }
  func.func @transform_5(%arg0: i32) -> (i32, i32) {
    %c0_i32 = arith.constant 0 : i32
    %c0_i32_0 = arith.constant 0 : i32
    %c0_i32_1 = arith.constant 0 : i32
    return %c0_i32, %c0_i32_0 : i32, i32
  }
  func.func @transform_6(%arg0: i32) -> (i32, i32) {
    %c0_i32 = arith.constant 0 : i32
    %c0_i32_0 = arith.constant 0 : i32
    return %arg0, %c0_i32 : i32, i32
  }
}

</mosaic_0001>

<bundles_post_ra>
// kernel: tpu_custom_call.1
= control target key start
LH: loop header
LB: loop body
LE: loop exit
PB: predicated region body
PF: predicated region fallthrough
CT: control target
= control target key end

     0   :  { %11 = vsyncpa [#allocation3], 0  ;;  %s2932_s21 = smov 0   ;;  %s4277_s0 = inlined_call_operand.vmem [shape: bf16[256,32], index: 0, kind: input, shape index: {}]   ;;  %s4278_s1 = inlined_call_operand.vmem [shape: bf16[32,96], index: 1, kind: input, shape index: {}]   ;;  %s4279_s2 = inlined_call_operand.vmem [shape: f32[1,96], index: 2, kind: input, shape index: {}]   ;;  %s4280_s3 = inlined_call_operand.hbm [shape: f32[4,128,128], index: 3, kind: input, shape index: {}]   ;;  %s4281_s4 = inlined_call_operand.vmem [shape: bf16[32,32], index: 4, kind: input, shape index: {}]   ;;  %s4282_s5 = inlined_call_operand.vmem [shape: f32[1,32], index: 5, kind: input, shape index: {}]   ;;  %s4283_s6 = inlined_call_operand.vmem [shape: f32[256,32], index: 6, kind: output, shape index: {}]  }
   0x1 LB: > { %s196_s24 = sshll.u32 %s4280_s3, 4  ;;  %s2406_s25 = sadd.s32 4294967295, %s2878_s21   ;;  %s2878_s21 = sphi %s2932_s21, %s17_s21   ;;  %s197_s24 = int_to_ptr.hbm [resolvable:$true] %s196_s24 }
   0x2   : > { %p2408_p0 = scmp.ge.s32.totalorder %s2878_s21, 1  ;;  %p179_p1 = scmp.lt.s32.totalorder %s2878_s21, 3 }
   0x3   : > { %p2553_p2 = scmp.eq.s32.totalorder %s2406_s25, 0  ;;  %s2880_s26 = smov [#allocation2]  }
   0x4   : > { %p180_p3 = pnand %p2408_p0, %p179_p1  ;;  %s198_s27 = sshll.u32 %s2880_s26, 4  ;;  %s199_s27 = int_to_ptr.vmem [resolvable:$true] %s198_s27 }
   0x5   : > { %s2881_s28 = smov 128   ;;  %s2882_s29 = smov 8  }
   0x6   : > { %p2549_p4 = pneg %p180_p3  ;;  %229 = sbr.rel (%p180_p3) target bundleno = 2039 (0x7f7), region = 44 }
   0x8   : > { %p2550_p5 = pnand %p2553_p2, %p2549_p4 }
   0xa   : > { %2552 = dma.hbm_to_vmem [thread:$0]  (!%p2550_p5), %s197_s24, 8192, %s199_s27, [#allocation3], %s2881_s28, %s2881_s28, %s2882_s29  }
   0xb   : > { %2873 = dma.done.wait (%p2553_p2), [#allocation3], 8192  }
   0xc   : > { %2875 = vsyncadd (%p2553_p2), [#allocation3], 4294959104  ;;  %s2413_s30 = sshll.u32 %s2406_s25, 4  ;;  %v2524_v0 = vld [vmem:[%s4278_s1 + $0x8] sm:$0xff]  ;;  %v2523_v1 = vld [vmem:[%s4278_s1] sm:$0xff]  ;;  %vm349_vm0 = vcmask 261120  }
   0xd   : > { %p261_p6 = scmp.lt.s32.totalorder %s2413_s30, 31  ;;  %2527 = vmatpush.bf16.msra.mxu3 %v2524_v0  ;;  %380 = vmatpush.bf16.msra.mxu0 %v2524_v0  ;;  %v2580_v14 = vld [vmem:[%s4279_s2] ss:$0 sm:$0xff]  ;;  %s2883_s17 = smov 96   ;;  %vm471_vm1 = vcmask 64512   ;;  %vm2203_vm2 = vcmask 130048  }
   0xe   : > { %s2884_s18 = smov 88   ;;  %s2885_s19 = smov 120   ;;  %vm2220_vm3 = vcmask 195584  }
   0xf   : > { %s4310_s30 = smov (!%p261_p6, %s2413_s30), 31  ;;  %s2886_s20 = smov 64  }
  0x10   : > { %s2414_s7 = sshll.u32 %s4310_s30, 2  ;;  %s2887_s22 = smov 80  }
  0x11   : > { %s264_s14 = scalar_lea.vmem %s4277_s0, %s2414_s7  ;;  %2528 = vmatpush.bf16.msra.mxu3 %v2523_v1  ;;  %381 = vmatpush.bf16.msra.mxu0 %v2523_v1  ;;  %s2888_s23 = smov 72  }
  0x12   : > { %v2517_v2 = vld [vmem:[%s264_s14 + $0x10] sm:$0xff]  ;;  %v2515_v3 = vld [vmem:[%s264_s14] sm:$0xff]  ;;  %v2518_v4 = vld [vmem:[%s264_s14 + $0x18] sm:$0xff]  ;;  %s2889_s24 = smov 112   ;;  %s2890_s25 = smov 104  }
  0x13   : > { %v2516_v5 = vld [vmem:[%s264_s14 + $0x8] sm:$0xff]  ;;  %v2519_v6 = vld [vmem:[%s264_s14 + $0x20] sm:$0xff]  ;;  %v2521_v8 = vld [vmem:[%s264_s14 + $0x30] sm:$0xff]  ;;  %s2891_s26 = smov 56   ;;  %s2892_s27 = smov 40  }
  0x14   : > { %2459 = vmatmul.msk.bf16.vlgmr.msra.gmra.mxu3 %vm349_vm0, %v2517_v2  ;;  %2457 = vmatmul.msk.bf16.vlgmr.msra.gmra.mxu0 %vm349_vm0, %v2515_v3  ;;  %v2520_v7 = vld [vmem:[%s264_s14 + $0x28] sm:$0xff]  ;;  %v2522_v9 = vld [vmem:[%s264_s14 + $0x38] sm:$0xff]  ;;  %s2893_s28 = smov 48   ;;  %s2894_s29 = smov 24  }
  0x15   : > { %s2895_s7 = smov 8   ;;  %s2896_s8 = smov 16  }
  0x16   : > { %s2416_s13 = sshll.u32 %s4310_s30, 3 }
  0x24   : > { %2460 = vmatmul.msk.bf16.gmra.mxu3 %vm349_vm0, %v2518_v4  ;;  %2458 = vmatmul.msk.bf16.gmra.mxu0 %vm349_vm0, %v2516_v5 }
  0x34   : > { %2461 = vmatmul.msk.bf16.gmra.mxu3 %vm349_vm0, %v2519_v6 }
  0x44   : > { %2462 = vmatmul.msk.bf16.gmra.mxu3 %vm349_vm0, %v2520_v7 }
  0x54   : > { %2463 = vmatmul.msk.bf16.gmra.mxu3 %vm349_vm0, %v2521_v8 }
  0x64   : > { %2464 = vmatmul.msk.bf16.gmra.mxu3 %vm349_vm0, %v2522_v9 }
  0x91   : > { %v383_v12 = vpop.f32.mrf.mxu0 }
  0x92   : > { %v384_v39 = vadd.f32 %v2580_v14, %v383_v12 }
  0x97   : > { %v393_v10 = vpop.f32.mrf.mxu3 }
  0x98   : > { %v394_v22 = vadd.f32 %v2580_v14, %v393_v10 }
  0x99   : > { %v385_v15 = vpop.f32.mrf.mxu0 }
  0x9a   : > { %v386_v40 = vadd.f32 %v2580_v14, %v385_v15 }
  0x9c   : > { %v2992_v42 = vpack.c.bf16 %v386_v40, %v384_v39 }
  0x9f   : > { %v395_v11 = vpop.f32.mrf.mxu3 }
  0xa0   : > { %v396_v20 = vadd.f32 %v2580_v14, %v395_v11 }
  0xa1   : > { %v388_v23 = vpop.f32.mrf.mxu0 }
  0xa2   : > { %v2970_v24 = vpack.c.bf16 %v396_v20, %v394_v22  ;;  %v389_v30 = vadd.f32 %v2580_v14, %v388_v23 }
  0xa7   : > { %v398_v13 = vpop.f32.mrf.mxu3 }
  0xa8   : > { %v399_v17 = vadd.f32 %v2580_v14, %v398_v13 }
  0xa9   : > { %v390_v29 = vpop.f32.mrf.mxu0 }
  0xaa   : > { %v391_v31 = vadd.f32 %v2580_v14, %v390_v29 }
  0xac   : > { %v2978_v33 = vpack.c.bf16 %v391_v31, %v389_v30 }
  0xaf   : > { %v400_v16 = vpop.f32.mrf.mxu3 }
  0xb0   : > { %v401_v18 = vadd.f32 %v2580_v14, %v400_v16 }
  0xb2   : > { %v2966_v19 = vpack.c.bf16 %v401_v18, %v399_v17 }
  0xb4   : > { %461 = vrot.lane.b32.xlu2 %v2966_v19, %s2883_s17 }
  0xb7   : > { %v403_v21 = vpop.f32.mrf.mxu3 }
  0xb8   : > { %v404_v26 = vadd.f32 %v2580_v14, %v403_v21 }
  0xbc   : > { %459 = vrot.lane.b32.xlu2 %v2970_v24, %s2883_s17 }
  0xbf   : > { %v405_v25 = vpop.f32.mrf.mxu3 }
  0xc0   : > { %v406_v27 = vadd.f32 %v2580_v14, %v405_v25 }
  0xc2   : > { %v2974_v28 = vpack.c.bf16 %v406_v27, %v404_v26 }
  0xc4   : > { %851 = vrot.lane.b32.xlu2 %v2974_v28, %s2884_s18 }
  0xc7   : > { %v408_v32 = vpop.f32.mrf.mxu3 }
  0xc8   : > { %v409_v34 = vadd.f32 %v2580_v14, %v408_v32 }
  0xcc   : > { %845 = vrot.lane.b32.xlu2 %v2978_v33, %s2884_s18 }
  0xcf   : > { %v410_v35 = vpop.f32.mrf.mxu3 }
  0xd0   : > { %v411_v36 = vadd.f32 %v2580_v14, %v410_v35 }
  0xd2   : > { %v2982_v37 = vpack.c.bf16 %v411_v36, %v409_v34 }
  0xd4   : > { %465 = vrot.lane.b32.xlu1 %v2982_v37, %s2883_s17  ;;  %831 = vrot.lane.b32.xlu2 %v2970_v24, %s2885_s19 }
  0xd7   : > { %v413_v38 = vpop.f32.mrf.mxu3 }
  0xd8   : > { %v414_v44 = vadd.f32 %v2580_v14, %v413_v38 }
  0xdc   : > { %463 = vrot.lane.b32.xlu1 %v2974_v28, %s2883_s17  ;;  %727 = vrot.lane.b32.xlu2 %v2966_v19, %s2886_s20 }
  0xdf   : > { %v415_v41 = vpop.f32.mrf.mxu3 }
  0xe0   : > { %v416_v45 = vadd.f32 %v2580_v14, %v415_v41 }
  0xe2   : > { %v3002_v49 = vpack.c.bf16 %v416_v45, %v414_v44 }
  0xe4   : > { %833 = vrot.lane.b32.xlu2 %v2966_v19, %s2885_s19  ;;  %455 = vrot.lane.b32.xlu1 %v2992_v42, %s2883_s17 }
  0xe7   : > { %v418_v43 = vpop.f32.mrf.mxu3 }
  0xe8   : > { %v419_v46 = vadd.f32 %v2580_v14, %v418_v43 }
  0xec   : > { %721 = vrot.lane.b32.xlu2 %v2992_v42, %s2886_s20  ;;  %853 = vrot.lane.b32.xlu1 %v2982_v37, %s2884_s18 }
  0xef   : > { %v420_v47 = vpop.f32.mrf.mxu3 }
  0xf0   : > { %v421_v48 = vadd.f32 %v2580_v14, %v420_v47 }
  0xf2   : > { %v3004_v50 = vpack.c.bf16 %v421_v48, %v419_v46 }
  0xf4   : > { %469 = vrot.lane.b32.xlu0 %v3004_v50, %s2883_s17  ;;  %1242 = vrot.lane.b32.xlu2 %v3002_v49, %s2887_s22 }
  0xf5   : > { %847 = vrot.lane.b32.xlu1 %v2970_v24, %s2884_s18 }
  0xfc   : > { %467 = vrot.lane.b32.xlu0 %v3002_v49, %s2883_s17  ;;  %1629 = vrot.lane.b32.xlu2 %v3002_v49, %s2888_s23 }
  0xfd   : > { %829 = vrot.lane.b32.xlu1 %v2978_v33, %s2885_s19 }
 0x104   : > { %457 = vrot.lane.b32.xlu0 %v2978_v33, %s2883_s17  ;;  %1240 = vrot.lane.b32.xlu2 %v2982_v37, %s2887_s22 }
 0x105   : > { %733 = vrot.lane.b32.xlu1 %v3002_v49, %s2886_s20 }
 0x10c   : > { %855 = vrot.lane.b32.xlu0 %v3002_v49, %s2884_s18  ;;  %837 = vrot.lane.b32.xlu2 %v2982_v37, %s2885_s19 }
 0x10d   : > { %731 = vrot.lane.b32.xlu1 %v2982_v37, %s2886_s20 }
 0x10e   : > { %v3030_v51 = vpop.permute.xlu2 %461 }
 0x10f   : > { %v506_v22 = vsel %vm471_vm1, %v3030_v51, 0 }
 0x114   : > { %849 = vrot.lane.b32.xlu0 %v2966_v19, %s2884_s18  ;;  %1627 = vrot.lane.b32.xlu2 %v2982_v37, %s2888_s23 }
 0x115   : > { %723 = vrot.lane.b32.xlu1 %v2978_v33, %s2886_s20 }
 0x116   : > { %v3038_v52 = vpop.permute.xlu2 %459 }
 0x117   : > { %v503_v27 = vsel %vm471_vm1, %v3038_v52, 0 }
 0x11c   : > { %1238 = vrot.lane.b32.xlu2 %v2974_v28, %s2887_s22  ;;  %843 = vrot.lane.b32.xlu0 %v2992_v42, %s2884_s18 }
 0x11d   : > { %1236 = vrot.lane.b32.xlu1 %v2966_v19, %s2887_s22 }
 0x11e   : > { %v3046_v53 = vpop.permute.xlu2 %851 }
 0x124   : > { %839 = vrot.lane.b32.xlu2 %v3002_v49, %s2885_s19  ;;  %827 = vrot.lane.b32.xlu0 %v2992_v42, %s2885_s19 }
 0x125   : > { %1234 = vrot.lane.b32.xlu1 %v2970_v24, %s2887_s22 }
 0x126   : > { %v3054_v54 = vpop.permute.xlu2 %845 }
 0x12c   : > { %1623 = vrot.lane.b32.xlu2 %v2966_v19, %s2888_s23  ;;  %729 = vrot.lane.b32.xlu0 %v2974_v28, %s2886_s20 }
 0x12d   : > { %1621 = vrot.lane.b32.xlu1 %v2970_v24, %s2888_s23 }
 0x12e   : > { %v3062_v55 = vpop.permute.xlu2 %831 }
 0x134   : > { %1230 = vrot.lane.b32.xlu2 %v2992_v42, %s2887_s22  ;;  %725 = vrot.lane.b32.xlu0 %v2970_v24, %s2886_s20 }
 0x135   : > { %1232 = vrot.lane.b32.xlu1 %v2978_v33, %s2887_s22 }
 0x136   : > { %v3070_v56 = vpop.permute.xlu2 %727 }
 0x13c   : > { %1216 = vrot.lane.b32.xlu2 %v2978_v33, %s2889_s24  ;;  %835 = vrot.lane.b32.xlu0 %v2974_v28, %s2885_s19 }
 0x13d   : > { %1619 = vrot.lane.b32.xlu1 %v2978_v33, %s2888_s23 }
 0x13e   : > { %v3078_v57 = vpop.permute.xlu2 %833 }
 0x144   : > { %1603 = vrot.lane.b32.xlu2 %v2978_v33, %s2890_s25  ;;  %1625 = vrot.lane.b32.xlu0 %v2974_v28, %s2888_s23 }
 0x145   : > { %1214 = vrot.lane.b32.xlu1 %v2992_v42, %s2889_s24 }
 0x146   : > { %v466_v58 = vpop.permute.xlu1 %465  ;;  %v3086_v59 = vpop.permute.xlu2 %721 }
 0x147   : > { %v512_v13 = vsel %vm471_vm1, %v466_v58, 0 }
 0x14c   : > { %1220 = vrot.lane.b32.xlu2 %v2966_v19, %s2889_s24  ;;  %1617 = vrot.lane.b32.xlu0 %v2992_v42, %s2888_s23 }
 0x14d   : > { %1601 = vrot.lane.b32.xlu1 %v2992_v42, %s2890_s25 }
 0x14e   : > { %v464_v60 = vpop.permute.xlu1 %463  ;;  %v3094_v61 = vpop.permute.xlu2 %1242 }
 0x14f   : > { %v509_v17 = vsel %vm471_vm1, %v464_v60, 0 }
 0x154   : > { %857 = vrot.lane.b32.xlu2 %v3004_v50, %s2884_s18  ;;  %1605 = vrot.lane.b32.xlu0 %v2970_v24, %s2890_s25  ;;  %s4204_s18 = scalar_lea.vmem %s4283_s6, %s2416_s13 }
 0x155   : > { %1218 = vrot.lane.b32.xlu1 %v2970_v24, %s2889_s24 }
 0x156   : > { %v3102_v62 = vpop.permute.xlu2 %1629  ;;  %v3104_v63 = vpop.permute.xlu1 %455 }
 0x157   : > { %v497_v38 = vsel %vm471_vm1, %v3104_v63, 0 }
 0x15c   : > { %1611 = vrot.lane.b32.xlu2 %v2982_v37, %s2890_s25  ;;  %1607 = vrot.lane.b32.xlu0 %v2966_v19, %s2890_s25 }
 0x15d   : > { %1609 = vrot.lane.b32.xlu1 %v2974_v28, %s2890_s25 }
 0x15e   : > { %v3112_v0 = vpop.permute.xlu2 %1240  ;;  %v3114_v1 = vpop.permute.xlu1 %853 }
 0x15f   : > { %v899_v60 = vsel %vm471_vm1, %v3114_v1, 0 }
 0x164   : > { %1118 = vrot.lane.b32.xlu2 %v2982_v37, %s2891_s26  ;;  %1222 = vrot.lane.b32.xlu0 %v2974_v28, %s2889_s24 }
 0x165   : > { %1631 = vrot.lane.b32.xlu1 %v3004_v50, %s2888_s23 }
 0x166   : > { %v470_v2 = vpop.permute.xlu0 %469  ;;  %v3122_v3 = vpop.permute.xlu2 %837 }
 0x167   : > { %v3124_v4 = vpop.permute.xlu1 %847  ;;  %v518_v5 = vsel %vm471_vm1, %v470_v2, 0 }
 0x168   : > { %520 = vmatpush.bf16.xpose.msra.mxu1 %v518_v5  ;;  %v896_v5 = vsel %vm471_vm1, %v3046_v53, 0 }
 0x16c   : > { %1110 = vrot.lane.b32.xlu2 %v2978_v33, %s2891_s26  ;;  %735 = vrot.lane.b32.xlu0 %v3004_v50, %s2886_s20 }
 0x16d   : > { %841 = vrot.lane.b32.xlu1 %v3004_v50, %s2885_s19 }
 0x16e   : > { %v468_v6 = vpop.permute.xlu0 %467  ;;  %v3133_v7 = vpop.permute.xlu2 %1627 }
 0x16f   : > { %v3135_v8 = vpop.permute.xlu1 %829  ;;  %v515_v9 = vsel %vm471_vm1, %v468_v6, 0 }
 0x170   : > { %521 = vmatpush.bf16.xpose.msra.mxu1 %v515_v9 }
 0x174   : > { %1244 = vrot.lane.b32.xlu0 %v3004_v50, %s2887_s22 }
 0x175   : > { %1224 = vrot.lane.b32.xlu1 %v2982_v37, %s2889_s24 }
 0x176   : > { %v458_v10 = vpop.permute.xlu0 %457  ;;  %v3142_v11 = vpop.permute.xlu2 %1238 }
 0x177   : > { %v3144_v12 = vpop.permute.xlu1 %733  ;;  %v500_v32 = vsel %vm471_vm1, %v458_v10, 0 }
 0x178   : > { %522 = vmatpush.bf16.xpose.msra.mxu1 %v512_v13 }
 0x17c   : > { %1116 = vrot.lane.b32.xlu0 %v2974_v28, %s2891_s26 }
 0x17d   : > { %1120 = vrot.lane.b32.xlu1 %v3002_v49, %s2891_s26 }
 0x17e   : > { %v856_v14 = vpop.permute.xlu0 %855  ;;  %v3151_v15 = vpop.permute.xlu2 %839 }
 0x17f   : > { %v3153_v16 = vpop.permute.xlu1 %731  ;;  %v902_v51 = vsel %vm471_vm1, %v856_v14, 0  ;;  %v890_v14 = vsel %vm471_vm1, %v3124_v4, 0 }
 0x180   : > { %523 = vmatpush.bf16.xpose.msra.mxu1 %v509_v17 }
 0x184   : > { %1122 = vrot.lane.b32.xlu0 %v3004_v50, %s2891_s26 }
 0x185   : > { %1226 = vrot.lane.b32.xlu1 %v3002_v49, %s2889_s24 }
 0x186   : > { %v850_v18 = vpop.permute.xlu0 %849  ;;  %v3160_v20 = vpop.permute.xlu2 %1623 }
 0x187   : > { %v3162_v21 = vpop.permute.xlu1 %723  ;;  %v893_v10 = vsel %vm471_vm1, %v850_v18, 0 }
 0x188   : > { %524 = vmatpush.bf16.xpose.msra.mxu1 %v506_v22  ;;  %v887_v22 = vsel %vm471_vm1, %v3054_v54, 0 }
 0x18c   : > { %1114 = vrot.lane.b32.xlu0 %v2966_v19, %s2891_s26 }
 0x18d   : > { %1613 = vrot.lane.b32.xlu1 %v3002_v49, %s2890_s25 }
 0x18e   : > { %v3170_v23 = vpop.permute.xlu2 %1230  ;;  %v3172_v25 = vpop.permute.xlu0 %843 }
 0x18f   : > { %v3174_v26 = vpop.permute.xlu1 %1236  ;;  %v884_v54 = vsel %vm471_vm1, %v3172_v25, 0 }
 0x190   : > { %525 = vmatpush.bf16.xpose.msra.mxu1 %v503_v27 }
 0x194   : > { %1228 = vrot.lane.b32.xlu0 %v3004_v50, %s2889_s24 }
 0x195   : > { %1112 = vrot.lane.b32.xlu1 %v2970_v24, %s2891_s26 }
 0x196   : > { %v3182_v29 = vpop.permute.xlu2 %1216  ;;  %v3184_v30 = vpop.permute.xlu0 %827 }
 0x197   : > { %v3186_v31 = vpop.permute.xlu1 %1234 }
 0x198   : > { %526 = vmatpush.bf16.xpose.msra.mxu1 %v500_v32 }
 0x19d   : > { %1615 = vrot.lane.b32.xlu1 %v3004_v50, %s2890_s25 }
 0x19e   : > { %v3191_v34 = vpop.permute.xlu2 %1603  ;;  %v730_v35 = vpop.permute.xlu0 %729 }
 0x19f   : > { %v3193_v36 = vpop.permute.xlu1 %1621 }
 0x1a0   : > { %527 = vmatpush.bf16.xpose.msra.mxu1 %v497_v38  ;;  %v1289_v38 = vsel %vm471_vm1, %v3094_v61, 0  ;;  %v1664_v61 = vsel %vm471_vm1, %v3193_v36, 0 }
 0x1a6   : > { %v3197_v39 = vpop.permute.xlu2 %1220  ;;  %v3199_v40 = vpop.permute.xlu0 %725 }
 0x1a7   : > { %v3201_v41 = vpop.permute.xlu1 %1232  ;;  %2465 = vmatmul.msk.bf16.vlgmr.msra.gmra.mxu1 %vm471_vm1, %v2992_v42 }
 0x1ae   : > { %v858_v43 = vpop.permute.xlu2 %857  ;;  %v3205_v44 = vpop.permute.xlu0 %835 }
 0x1af   : > { %v3207_v45 = vpop.permute.xlu1 %1619  ;;  %v905_v46 = vsel %vm471_vm1, %v858_v43, 0  ;;  %v1286_v43 = vsel %vm471_vm1, %v3112_v0, 0 }
 0x1b0   : > { %907 = vmatpush.bf16.xpose.msrb.mxu3 %v905_v46  ;;  %v1661_v0 = vsel %vm471_vm1, %v3207_v45, 0  ;;  %v432_v45 = vld [vmem:[#allocation2 + $0x8] sm:$0xff] }
 0x1b6   : > { %v3210_v47 = vpop.permute.xlu0 %1625 }
 0x1b7   : > { %v3212_v48 = vpop.permute.xlu1 %1214  ;;  %2466 = vmatmul.msk.bf16.gmra.mxu1 %vm471_vm1, %v2978_v33 }
 0x1b8   : > { %908 = vmatpush.bf16.xpose.msrb.mxu3 %v902_v51 }
 0x1be   : > { %v3217_v52 = vpop.permute.xlu0 %1617 }
 0x1bf   : > { %v3219_v58 = vpop.permute.xlu1 %1601  ;;  %v1658_v36 = vsel %vm471_vm1, %v3217_v52, 0 }
 0x1c0   : > { %909 = vmatpush.bf16.xpose.msrb.mxu3 %v899_v60  ;;  %v1277_v60 = vsel %vm471_vm1, %v3186_v31, 0  ;;  %v1271_v31 = vsel %vm471_vm1, %v3170_v23, 0 }
 0x1c6   : > { %v3223_v63 = vpop.permute.xlu0 %1605 }
 0x1c7   : > { %v3225_v2 = vpop.permute.xlu1 %1218  ;;  %2467 = vmatmul.msk.bf16.gmra.mxu1 %vm471_vm1, %v2970_v24 }
 0x1c8   : > { %910 = vmatpush.bf16.xpose.msrb.mxu3 %v896_v5 }
 0x1ce   : > { %v3231_v6 = vpop.permute.xlu0 %1607 }
 0x1cf   : > { %v3233_v9 = vpop.permute.xlu1 %1609 }
 0x1d0   : > { %911 = vmatpush.bf16.xpose.msrb.mxu3 %v893_v10  ;;  %v1274_v10 = vsel %vm471_vm1, %v3201_v41, 0 }
 0x1d6   : > { %v3236_v1 = vpop.permute.xlu0 %1222 }
 0x1d7   : > { %v1632_v13 = vpop.permute.xlu1 %1631  ;;  %2468 = vmatmul.msk.bf16.gmra.mxu1 %vm471_vm1, %v2966_v19 }
 0x1d8   : > { %912 = vmatpush.bf16.xpose.msrb.mxu3 %v890_v14  ;;  %v1679_v27 = vsel %vm471_vm1, %v1632_v13, 0 }
 0x1de   : > { %v736_v17 = vpop.permute.xlu0 %735 }
 0x1df   : > { %v3242_v53 = vpop.permute.xlu1 %841  ;;  %745 = vmatpush.bf16.msrb.mxu0 %v736_v17  ;;  %2529 = vmatpush.bf16.msrb.mxu1 %v736_v17 }
 0x1e0   : > { %2530 = vmatpush.bf16.msra.mxu2 %v736_v17  ;;  %913 = vmatpush.bf16.xpose.msrb.mxu3 %v887_v22 }
 0x1e3   : > { %746 = vmatpush.bf16.msrb.mxu0 %v3144_v12  ;;  %2531 = vmatpush.bf16.msrb.mxu1 %v3144_v12 }
 0x1e4   : > { %2532 = vmatpush.bf16.msra.mxu2 %v3144_v12  ;;  %v1676_v12 = vsel %vm471_vm1, %v3102_v62, 0  ;;  %v3276_v62 = vpop.permute.xlu2 %1611 }
 0x1e6   : > { %v1245_v4 = vpop.permute.xlu0 %1244 }
 0x1e7   : > { %2469 = vmatmul.msk.bf16.gmra.mxu1 %vm471_vm1, %v2974_v28  ;;  %747 = vmatpush.bf16.msrb.mxu0 %v3153_v16  ;;  %v3252_v18 = vpop.permute.xlu1 %1224 }
 0x1e8   : > { %2533 = vmatpush.bf16.msrb.mxu1 %v3153_v16  ;;  %2534 = vmatpush.bf16.msra.mxu2 %v3153_v16 }
 0x1e9   : > { %914 = vmatpush.bf16.xpose.msrb.mxu3 %v884_v54 }
 0x1eb   : > { %748 = vmatpush.bf16.msrb.mxu0 %v730_v35 }
 0x1ec   : > { %2535 = vmatpush.bf16.msrb.mxu1 %v730_v35  ;;  %2536 = vmatpush.bf16.msra.mxu2 %v730_v35  ;;  %v1292_v35 = vsel %vm471_vm1, %v1245_v4, 0  ;;  %v811_v4 = vld [vmem:[#allocation2 + $0x80] sm:$0xff] }
 0x1ee   : > { %v1117_v16 = vpop.permute.xlu0 %1116 }
 0x1ef   : > { %749 = vmatpush.bf16.msrb.mxu0 %v3070_v56  ;;  %v1121_v25 = vpop.permute.xlu1 %1120 }
 0x1f0   : > { %2537 = vmatpush.bf16.msrb.mxu1 %v3070_v56  ;;  %2538 = vmatpush.bf16.msra.mxu2 %v3070_v56  ;;  %v1673_v56 = vsel %vm471_vm1, %v3133_v7, 0  ;;  %v1670_v7 = vsel %vm471_vm1, %v3210_v47, 0 }
 0x1f1   : > { %1681 = vmatpush.bf16.xpose.msra.mxu3 %v1679_v27 }
 0x1f2   : > { %2473 = vmatmul.msk.bf16.vlgmr.msrb.gmra.mxu3 %vm471_vm1, %v3184_v30 }
 0x1f3   : > { %750 = vmatpush.bf16.msrb.mxu0 %v3199_v40 }
 0x1f4   : > { %2539 = vmatpush.bf16.msrb.mxu1 %v3199_v40  ;;  %2540 = vmatpush.bf16.msra.mxu2 %v3199_v40 }
 0x1f6   : > { %v1123_v30 = vpop.permute.xlu0 %1122 }
 0x1f7   : > { %2470 = vmatmul.msk.bf16.gmra.mxu1 %vm471_vm1, %v2982_v37  ;;  %751 = vmatpush.bf16.msrb.mxu0 %v3162_v21  ;;  %v3279_v32 = vpop.permute.xlu1 %1226 }
 0x1f8   : > { %2541 = vmatpush.bf16.msrb.mxu1 %v3162_v21  ;;  %2542 = vmatpush.bf16.msra.mxu2 %v3162_v21  ;;  %v1119_v21 = vpop.permute.xlu2 %1118 }
 0x1f9   : > { %1682 = vmatpush.bf16.xpose.msra.mxu3 %v1676_v12  ;;  %v434_v12 = vld [vmem:[#allocation2 + $0x18] sm:$0xff] }
 0x1fb   : > { %752 = vmatpush.bf16.msrb.mxu0 %v3086_v59 }
 0x1fc   : > { %2543 = vmatpush.bf16.msrb.mxu1 %v3086_v59  ;;  %2544 = vmatpush.bf16.msra.mxu2 %v3086_v59  ;;  %v1667_v59 = vsel %vm471_vm1, %v3160_v20, 0  ;;  %v1283_v20 = vsel %vm471_vm1, %v3142_v11, 0  ;;  %v431_v11 = vld [vmem:[#allocation2] sm:$0xff] }
 0x1ff   : > { %1132 = vmatpush.bf16.msra.mxu0 %v1123_v30  ;;  %v3290_v40 = vpop.permute.xlu1 %1613 }
 0x200   : > { %1294 = vmatpush.bf16.xpose.msrb.mxu2 %v1292_v35  ;;  %v1111_v47 = vpop.permute.xlu2 %1110 }
 0x201   : > { %1683 = vmatpush.bf16.xpose.msra.mxu3 %v1673_v56 }
 0x202   : > { %2474 = vmatmul.msk.bf16.gmra.mxu3 %vm471_vm1, %v3135_v8  ;;  %v1115_v8 = vpop.permute.xlu0 %1114 }
 0x203   : > { %1133 = vmatpush.bf16.msra.mxu0 %v1121_v25 }
 0x207   : > { %1134 = vmatpush.bf16.msra.mxu0 %v1119_v21  ;;  %2471 = vmatmul.msk.bf16.gmra.mxu1 %vm471_vm1, %v3002_v49  ;;  %v1113_v46 = vpop.permute.xlu1 %1112  ;;  %v813_v21 = vld [vmem:[#allocation2 + $0x90] sm:$0xff] }
 0x208   : > { %1295 = vmatpush.bf16.xpose.msrb.mxu2 %v1289_v38  ;;  %v814_v38 = vld [vmem:[#allocation2 + $0x98] sm:$0xff] }
 0x209   : > { %1684 = vmatpush.bf16.xpose.msra.mxu3 %v1670_v7 }
 0x20b   : > { %1135 = vmatpush.bf16.msra.mxu0 %v1117_v16 }
 0x20f   : > { %1136 = vmatpush.bf16.msra.mxu0 %v1115_v8 }
 0x210   : > { %1296 = vmatpush.bf16.xpose.msrb.mxu2 %v1286_v43 }
 0x211   : > { %1685 = vmatpush.bf16.xpose.msra.mxu3 %v1667_v59 }
 0x212   : > { %2475 = vmatmul.msk.bf16.gmra.mxu3 %vm471_vm1, %v3062_v55  ;;  %v1280_v55 = vsel %vm471_vm1, %v3174_v26, 0 }
 0x213   : > { %1137 = vmatpush.bf16.msra.mxu0 %v1113_v46 }
 0x217   : > { %1138 = vmatpush.bf16.msra.mxu0 %v1111_v47  ;;  %2472 = vmatmul.msk.bf16.gmra.mxu1 %vm471_vm1, %v3004_v50  ;;  %v435_v47 = vld [vmem:[#allocation2 + $0x20] sm:$0xff] }
 0x218   : > { %1297 = vmatpush.bf16.xpose.msrb.mxu2 %v1283_v20 }
 0x219   : > { %1686 = vmatpush.bf16.xpose.msra.mxu3 %v1664_v61  ;;  %v815_v61 = vld [vmem:[#allocation2 + $0xa0] sm:$0xff] }
 0x220   : > { %1298 = vmatpush.bf16.xpose.msrb.mxu2 %v1280_v55 }
 0x221   : > { %1687 = vmatpush.bf16.xpose.msra.mxu3 %v1661_v0 }
 0x222   : > { %2476 = vmatmul.msk.bf16.gmra.mxu3 %vm471_vm1, %v3078_v57 }
 0x224   : > { %v529_v51 = vpop.f32.mrf.mxu1 }
 0x225   : > { %v3316_v5 = vadd.f32 %v529_v51, %v431_v11  ;;  %v446_v51 = vld [vmem:[#allocation2 + $0x78] sm:$0xff] }
 0x227   : > { %569 = vmax.xlane.f32.xlu0 %v3316_v5 }
 0x228   : > { %1299 = vmatpush.bf16.xpose.msrb.mxu2 %v1277_v60  ;;  %v436_v60 = vld [vmem:[#allocation2 + $0x28] sm:$0xff] }
 0x229   : > { %1688 = vmatpush.bf16.xpose.msra.mxu3 %v1658_v36 }
 0x22c   : > { %v531_v26 = vpop.f32.mrf.mxu1 }
 0x22d   : > { %v3321_v57 = vadd.f32 %v531_v26, %v432_v45 }
 0x22f   : > { %571 = vmax.xlane.f32.xlu1 %v3321_v57 }
 0x230   : > { %1300 = vmatpush.bf16.xpose.msrb.mxu2 %v1274_v10 }
 0x232   : > { %2477 = vmatmul.msk.bf16.gmra.mxu3 %vm471_vm1, %v3205_v44 }
 0x234   : > { %v534_v52 = vpop.f32.mrf.mxu1 }
 0x238   : > { %1301 = vmatpush.bf16.xpose.msrb.mxu2 %v1271_v31 }
 0x23c   : > { %v536_v13 = vpop.f32.mrf.mxu1 }
 0x242   : > { %2478 = vmatmul.msk.bf16.gmra.mxu3 %vm471_vm1, %v3122_v3 }
 0x244   : > { %v539_v14 = vpop.f32.mrf.mxu1 }
 0x245   : > { %v3370_v11 = vadd.f32 %v539_v14, %v435_v47 }
 0x24c   : > { %v541_v17 = vpop.f32.mrf.mxu1 }
 0x252   : > { %2479 = vmatmul.msk.bf16.gmra.mxu3 %vm471_vm1, %v3151_v15  ;;  %v812_v15 = vld [vmem:[#allocation2 + $0x88] sm:$0xff] }
 0x254   : > { %v3332_v41 = vpop.f32.mrf.mxu1 }
 0x25c   : > { %v3334_v22 = vpop.f32.mrf.mxu1 }
 0x262   : > { %2480 = vmatmul.msk.bf16.gmra.mxu3 %vm471_vm1, %v3242_v53  ;;  %v3347_v53 = vadd.f32 %v536_v13, %v434_v12  ;;  %v817_v13 = vld [vmem:[#allocation2 + $0xb0] sm:$0xff] }
 0x264   : > { %v3338_v44 = vpop.f32.mrf.mxu1 }
 0x26c   : > { %v551_v23 = vpop.f32.mrf.mxu1 }
 0x272   : > { %2489 = vmatmul.msk.bf16.vlgmr.msra.gmra.mxu3 %vm471_vm1, %v3219_v58  ;;  %v433_v58 = vld [vmem:[#allocation2 + $0x10] sm:$0xff] }
 0x273   : > { %v3353_v7 = vadd.f32 %v534_v52, %v433_v58  ;;  %v3377_v52 = vadd.f32 %v541_v17, %v436_v60  ;;  %v440_v17 = vld [vmem:[#allocation2 + $0x48] sm:$0xff]  ;;  %v442_v58 = vld [vmem:[#allocation2 + $0x58] sm:$0xff] }
 0x274   : > { %v554_v54 = vpop.f32.mrf.mxu1 }
 0x275   : > { %v916_v3 = vpop.f32.mrf.mxu3 }
 0x276   : > { %v3342_v27 = vadd.f32 %v916_v3, %v811_v4  ;;  %v818_v3 = vld [vmem:[#allocation2 + $0xb8] sm:$0xff] }
 0x278   : > { %956 = vmax.xlane.f32.xlu0 %v3342_v27 }
 0x27c   : > { %v556_v25 = vpop.f32.mrf.mxu1 }
 0x27d   : > { %v918_v16 = vpop.f32.mrf.mxu3 }
 0x27e   : > { %v3345_v56 = vadd.f32 %v918_v16, %v812_v15  ;;  %v3389_v15 = vpop.permute.xlu0 %1228  ;;  %v3393_v16 = vadd.f32 %v551_v23, %v440_v17 }
 0x280   : > { %958 = vmax.xlane.f32.xlu2 %v3345_v56  ;;  %575 = vmax.xlane.f32.xlu0 %v3347_v53 }
 0x282   : > { %2490 = vmatmul.msk.bf16.gmra.mxu3 %vm471_vm1, %v3191_v34  ;;  %v441_v34 = vld [vmem:[#allocation2 + $0x50] sm:$0xff] }
 0x283   : > { %v3366_v55 = vadd.f32 %v554_v54, %v441_v34  ;;  %v445_v34 = vld [vmem:[#allocation2 + $0x70] sm:$0xff] }
 0x284   : > { %v559_v35 = vpop.f32.mrf.mxu1 }
 0x285   : > { %v921_v30 = vpop.f32.mrf.mxu3 }
 0x286   : > { %v3358_v43 = vadd.f32 %v921_v30, %v813_v21  ;;  %v1616_v30 = vpop.permute.xlu1 %1615 }
 0x288   : > { %573 = vmax.xlane.f32.xlu2 %v3353_v7 }
 0x28c   : > { %v3356_v8 = vpop.f32.mrf.mxu1 }
 0x28d   : > { %v923_v59 = vpop.f32.mrf.mxu3 }
 0x28e   : > { %v3360_v46 = vadd.f32 %v923_v59, %v814_v38  ;;  %v3402_v59 = vadd.f32 %v556_v25, %v442_v58 }
 0x290   : > { %962 = vmax.xlane.f32.xlu0 %v3360_v46  ;;  %960 = vmax.xlane.f32.xlu2 %v3358_v43 }
 0x292   : > { %2491 = vmatmul.msk.bf16.gmra.mxu3 %vm471_vm1, %v3223_v63  ;;  %v816_v63 = vld [vmem:[#allocation2 + $0xa8] sm:$0xff] }
 0x294   : > { %v564_v0 = vpop.f32.mrf.mxu1 }
 0x295   : > { %v926_v20 = vpop.f32.mrf.mxu3 }
 0x296   : > { %v3368_v36 = vadd.f32 %v926_v20, %v815_v61  ;;  %v443_v61 = vld [vmem:[#allocation2 + $0x60] sm:$0xff]  ;;  %v3407_v20 = vadd.f32 %v564_v0, %v445_v34 }
 0x298   : > { %964 = vmax.xlane.f32.xlu1 %v3368_v36  ;;  %589 = vmax.xlane.f32.xlu0 %v3366_v55 }
 0x299   : > { %577 = vmax.xlane.f32.xlu2 %v3370_v11 }
 0x29a   : > { %v570_v38 = vpop.xlane.xlu0 %569 }
 0x29b   : > { %v601_v23 = vsub.f32 %v3316_v5, %v570_v38  ;;  %v444_v5 = vld [vmem:[#allocation2 + $0x68] sm:$0xff] }
 0x29c   : > { %v566_v26 = vpop.f32.mrf.mxu1  ;;  %v3419_v0 = vadd.f32 %v3356_v8, %v444_v5 }
 0x29d   : > { %v928_v45 = vpop.f32.mrf.mxu3  ;;  %v3375_v10 = vadd.f32 %v566_v26, %v446_v51  ;;  %v617_v47 = vmul.f32 1.442695, %v601_v23  ;;  %v3409_v51 = vadd.f32 %v559_v35, %v443_v61 }
 0x29e   : > { %v3379_v31 = vadd.f32 %v928_v45, %v816_v63 }
 0x29f   : > { %2582 = vpow2.f32 %v617_v47 }
 0x2a0   : > { %579 = vmax.xlane.f32.xlu1 %v3377_v52  ;;  %599 = vmax.xlane.f32.xlu0 %v3375_v10 }
 0x2a1   : > { %966 = vmax.xlane.f32.xlu2 %v3379_v31 }
 0x2a2   : > { %2492 = vmatmul.msk.bf16.gmra.mxu3 %vm471_vm1, %v3231_v6  ;;  %v439_v6 = vld [vmem:[#allocation2 + $0x40] sm:$0xff] }
 0x2a3   : > { %v3400_v21 = vadd.f32 %v3338_v44, %v439_v6 }
 0x2a5   : > { %v931_v14 = vpop.f32.mrf.mxu3  ;;  %v3416_v60 = vpop.eup %2582 }
 0x2a6   : > { %v3386_v4 = vadd.f32 %v931_v14, %v817_v13 }
 0x2a9   : > { %968 = vmax.xlane.f32.xlu2 %v3386_v4 }
 0x2ad   : > { %v933_v54 = vpop.f32.mrf.mxu3 }
 0x2ae   : > { %v3391_v12 = vadd.f32 %v933_v54, %v818_v3 }
 0x2b0   : > { %970 = vmax.xlane.f32.xlu1 %v3391_v12 }
 0x2b1   : > { %587 = vmax.xlane.f32.xlu2 %v3393_v16 }
 0x2b2   : > { %2493 = vmatmul.msk.bf16.gmra.mxu3 %vm471_vm1, %v3233_v9  ;;  %v572_v9 = vpop.xlane.xlu1 %571 }
 0x2b3   : > { %v602_v44 = vsub.f32 %v3321_v57, %v572_v9 }
 0x2b5   : > { %v619_v25 = vmul.f32 1.442695, %v602_v44 }
 0x2b7   : > { %2584 = vpow2.f32 %v619_v25 }
 0x2b8   : > { %585 = vmax.xlane.f32.xlu1 %v3400_v21 }
 0x2b9   : > { %591 = vmax.xlane.f32.xlu2 %v3402_v59 }
 0x2bd   : > { %v3423_v35 = vpop.eup %2584 }
 0x2c0   : > { %597 = vmax.xlane.f32.xlu1 %v3407_v20 }
 0x2c1   : > { %593 = vmax.xlane.f32.xlu2 %v3409_v51 }
 0x2c2   : > { %2494 = vmatmul.msk.bf16.gmra.mxu3 %vm471_vm1, %v3276_v62 }
 0x2c8   : > { %649 = vadd.xlane.f32.xlu1 %v3416_v60 }
 0x2c9   : > { %595 = vmax.xlane.f32.xlu2 %v3419_v0 }
 0x2d0   : > { %651 = vadd.xlane.f32.xlu1 %v3423_v35 }
 0x2d2   : > { %2495 = vmatmul.msk.bf16.gmra.mxu3 %vm471_vm1, %v3290_v40 }
 0x2e2   : > { %2496 = vmatmul.msk.bf16.gmra.mxu3 %vm471_vm1, %v1616_v30  ;;  %v3444_v30 = vpop.f32.mrf.mxu3 }
 0x2ea   : > { %v3457_v5 = vpop.f32.mrf.mxu3 }
 0x2eb   : > { %v957_v62 = vpop.xlane.xlu0 %956 }
 0x2ec   : > { %v988_v57 = vsub.f32 %v3342_v27, %v957_v62 }
 0x2ee   : > { %v1004_v63 = vmul.f32 1.442695, %v988_v57 }
 0x2f0   : > { %2586 = vpow2.f32 %v1004_v63 }
 0x2f3   : > { %v959_v8 = vpop.xlane.xlu2 %958  ;;  %v576_v40 = vpop.xlane.xlu0 %575 }
 0x2f4   : > { %v989_v45 = vsub.f32 %v3345_v56, %v959_v8  ;;  %v604_v27 = vsub.f32 %v3347_v53, %v576_v40 }
 0x2f6   : > { %v3431_v26 = vpop.eup %2586  ;;  %v1006_v13 = vmul.f32 1.442695, %v989_v45  ;;  %v623_v56 = vmul.f32 1.442695, %v604_v27 }
 0x2f7   : > { %1036 = vadd.xlane.f32.xlu0 %v3431_v26 }
 0x2f8   : > { %2588 = vpow2.f32 %v1006_v13  ;;  %v3467_v13 = vpop.f32.mrf.mxu3 }
 0x2fb   : > { %v574_v14 = vpop.xlane.xlu2 %573 }
 0x2fc   : > { %v603_v3 = vsub.f32 %v3353_v7, %v574_v14 }
 0x2fe   : > { %v3435_v17 = vpop.eup %2588  ;;  %v621_v54 = vmul.f32 1.442695, %v603_v3 }
 0x2ff   : > { %1038 = vadd.xlane.f32.xlu2 %v3435_v17 }
 0x300   : > { %2590 = vpow2.f32 %v621_v54  ;;  %v3476_v54 = vpop.f32.mrf.mxu3 }
 0x301   : > { %2592 = vpow2.f32 %v623_v56 }
 0x303   : > { %v3439_v6 = vpop.xlane.xlu2 %960  ;;  %v3446_v7 = vpop.xlane.xlu0 %962 }
 0x306   : > { %v3441_v58 = vpop.eup %2590 }
 0x307   : > { %653 = vadd.xlane.f32.xlu2 %v3441_v58  ;;  %v3451_v61 = vpop.eup %2592 }
 0x30b   : > { %v3448_v38 = vpop.xlane.xlu1 %964  ;;  %v590_v25 = vpop.xlane.xlu0 %589 }
 0x30c   : > { %v578_v23 = vpop.xlane.xlu2 %577  ;;  %v611_v63 = vsub.f32 %v3366_v55, %v590_v25 }
 0x30d   : > { %v605_v34 = vsub.f32 %v3370_v11, %v578_v23 }
 0x30e   : > { %v637_v11 = vmul.f32 1.442695, %v611_v63 }
 0x30f   : > { %v625_v53 = vmul.f32 1.442695, %v605_v34  ;;  %655 = vadd.xlane.f32.xlu2 %v3451_v61 }
 0x311   : > { %2594 = vpow2.f32 %v625_v53 }
 0x313   : > { %v580_v47 = vpop.xlane.xlu1 %579  ;;  %v600_v34 = vpop.xlane.xlu0 %599 }
 0x314   : > { %v3454_v9 = vpop.xlane.xlu2 %966  ;;  %v606_v44 = vsub.f32 %v3377_v52, %v580_v47 }
 0x316   : > { %v627_v62 = vmul.f32 1.442695, %v606_v44 }
 0x317   : > { %v3459_v57 = vpop.eup %2594 }
 0x318   : > { %2596 = vpow2.f32 %v627_v62  ;;  %657 = vadd.xlane.f32.xlu1 %v3459_v57  ;;  %v3484_v62 = vpop.f32.mrf.mxu3 }
 0x319   : > { %2598 = vpow2.f32 %v637_v11 }
 0x31c   : > { %v3463_v8 = vpop.xlane.xlu2 %968 }
 0x31e   : > { %v3465_v45 = vpop.eup %2596 }
 0x31f   : > { %659 = vadd.xlane.f32.xlu0 %v3465_v45  ;;  %v3473_v40 = vpop.eup %2598 }
 0x323   : > { %v3470_v52 = vpop.xlane.xlu1 %970 }
 0x324   : > { %v588_v14 = vpop.xlane.xlu2 %587 }
 0x325   : > { %v610_v3 = vsub.f32 %v3393_v16, %v588_v14  ;;  %v616_v16 = vsub.f32 %v3375_v10, %v600_v34  ;;  %v948_v34 = vpop.f32.mrf.mxu3 }
 0x327   : > { %v635_v55 = vmul.f32 1.442695, %v610_v3  ;;  %669 = vadd.xlane.f32.xlu0 %v3473_v40  ;;  %v647_v11 = vmul.f32 1.442695, %v616_v16 }
 0x329   : > { %2600 = vpow2.f32 %v635_v55 }
 0x32b   : > { %v586_v27 = vpop.xlane.xlu1 %585 }
 0x32c   : > { %v592_v56 = vpop.xlane.xlu2 %591  ;;  %v609_v23 = vsub.f32 %v3400_v21, %v586_v27 }
 0x32d   : > { %v612_v53 = vsub.f32 %v3402_v59, %v592_v56 }
 0x32e   : > { %v633_v47 = vmul.f32 1.442695, %v609_v23 }
 0x32f   : > { %v3480_v44 = vpop.eup %2600  ;;  %v639_v25 = vmul.f32 1.442695, %v612_v53 }
 0x330   : > { %2602 = vpow2.f32 %v633_v47  ;;  %667 = vadd.xlane.f32.xlu1 %v3480_v44 }
 0x331   : > { %2604 = vpow2.f32 %v639_v25 }
 0x332   : > { %2606 = vpow2.f32 %v647_v11 }
 0x333   : > { %v598_v63 = vpop.xlane.xlu1 %597 }
 0x334   : > { %v594_v14 = vpop.xlane.xlu2 %593  ;;  %v615_v10 = vsub.f32 %v3407_v20, %v598_v63  ;;  %v990_v20 = vsub.f32 %v3358_v43, %v3439_v6  ;;  %v992_v43 = vsub.f32 %v3368_v36, %v3448_v38 }
 0x335   : > { %v613_v21 = vsub.f32 %v3409_v51, %v594_v14  ;;  %v951_v14 = vpop.f32.mrf.mxu3 }
 0x336   : > { %v3487_v3 = vpop.eup %2602  ;;  %v645_v56 = vmul.f32 1.442695, %v615_v10  ;;  %v1008_v63 = vmul.f32 1.442695, %v990_v20  ;;  %v819_v10 = vld [vmem:[#allocation2 + $0xc0] sm:$0xff] }
 0x337   : > { %v3489_v59 = vpop.eup %2604  ;;  %v641_v55 = vmul.f32 1.442695, %v613_v21  ;;  %665 = vadd.xlane.f32.xlu2 %v3487_v3  ;;  %v3516_v20 = vadd.f32 %v3444_v30, %v819_v10  ;;  %v824_v30 = vld [vmem:[#allocation2 + $0xe8] sm:$0xff] }
 0x338   : > { %671 = vadd.xlane.f32.xlu1 %v3489_v59  ;;  %v3495_v51 = vpop.eup %2606 }
 0x339   : > { %2608 = vpow2.f32 %v641_v55  ;;  %v991_v55 = vsub.f32 %v3360_v46, %v3446_v7 }
 0x33a   : > { %2610 = vpow2.f32 %v645_v56 }
 0x33b   : > { %v650_v27 = vpop.xlane.xlu1 %649 }
 0x33c   : > { %v596_v23 = vpop.xlane.xlu2 %595 }
 0x33d   : > { %v614_v53 = vsub.f32 %v3419_v0, %v596_v23  ;;  %v1010_v23 = vmul.f32 1.442695, %v991_v55  ;;  %v953_v36 = vpop.f32.mrf.mxu3  ;;  %v437_v55 = vld [vmem:[#allocation2 + $0x30] sm:$0xff] }
 0x33f   : > { %v3497_v47 = vpop.eup %2608  ;;  %v643_v25 = vmul.f32 1.442695, %v614_v53  ;;  %679 = vadd.xlane.f32.xlu2 %v3495_v51  ;;  %v1012_v53 = vmul.f32 1.442695, %v992_v43  ;;  %v823_v43 = vld [vmem:[#allocation2 + $0xe0] sm:$0xff] }
 0x340   : > { %673 = vadd.xlane.f32.xlu0 %v3497_v47  ;;  %v3503_v11 = vpop.eup %2610 }
 0x341   : > { %2612 = vpow2.f32 %v643_v25 }
 0x342   : > { %2614 = vrcp.f32 %v650_v27 }
 0x343   : > { %v652_v16 = vpop.xlane.xlu1 %651 }
 0x344   : > { %2616 = vrcp.f32 %v652_v16 }
 0x345   : > { %2618 = vpow2.f32 %v1008_v63  ;;  %v3530_v38 = vpop.f32.mrf.mxu3  ;;  %v3535_v63 = vadd.f32 %v948_v34, %v824_v30  ;;  %v820_v30 = vld [vmem:[#allocation2 + $0xc8] sm:$0xff] }
 0x346   : > { %2620 = vpow2.f32 %v1010_v23 }
 0x347   : > { %v3505_v0 = vpop.eup %2612  ;;  %2622 = vpow2.f32 %v1012_v53 }
 0x348   : > { %v2615_v21 = vpop.eup %2614  ;;  %675 = vadd.xlane.f32.xlu1 %v3505_v0  ;;  %677 = vadd.xlane.f32.xlu0 %v3503_v11 }
 0x349   : > { %v697_v27 = vmul.f32 %v2615_v21, %v3416_v60  ;;  %v995_v21 = vsub.f32 %v3391_v12, %v3470_v52  ;;  %v825_v52 = vld [vmem:[#allocation2 + $0xf0] sm:$0xff] }
 0x34a   : > { %v2617_v6 = vpop.eup %2616  ;;  %v3559_v53 = vadd.f32 %v951_v14, %v825_v52  ;;  %v993_v14 = vsub.f32 %v3379_v31, %v3454_v9 }
 0x34b   : > { %v698_v56 = vmul.f32 %v2617_v6, %v3423_v35  ;;  %v3518_v46 = vpop.eup %2618  ;;  %v822_v35 = vld [vmem:[#allocation2 + $0xd8] sm:$0xff]  ;;  %v1018_v10 = vmul.f32 1.442695, %v995_v21 }
 0x34c   : > { %v3522_v7 = vpop.eup %2620  ;;  %v3533_v16 = vadd.f32 %v3476_v54, %v822_v35  ;;  %v826_v54 = vld [vmem:[#allocation2 + $0xf8] sm:$0xff] }
 0x34d   : > { %v713_v25 = vpack.c.bf16 %v698_v56, %v697_v27  ;;  %v3524_v60 = vpop.eup %2622  ;;  %v1692_v6 = vpop.f32.mrf.mxu3  ;;  %v3542_v27 = vadd.f32 %v3332_v41, %v437_v55  ;;  %v3545_v56 = vadd.f32 %v3484_v62, %v823_v43  ;;  %2624 = vpow2.f32 %v1018_v10  ;;  %v1586_v62 = vld [vmem:[#allocation2 + $0x188] sm:$0xff]  ;;  %v1588_v21 = vld [vmem:[#allocation2 + $0x198] sm:$0xff]  ;;  %v821_v10 = vld [vmem:[#allocation2 + $0xd0] sm:$0xff] }
 0x34e   : > { %v3549_v34 = vadd.f32 %v953_v36, %v826_v54  ;;  %v3566_v55 = vadd.f32 %v3457_v5, %v820_v30  ;;  %v1589_v54 = vld [vmem:[#allocation2 + $0x1a0] sm:$0xff]  ;;  %v994_v30 = vsub.f32 %v3386_v4, %v3463_v8 }
 0x34f   : > { %753 = vmatmul.bf16.vlgmr.msrb.gmra.mxu0 %v713_v25  ;;  %v3561_v25 = vadd.f32 %v1692_v6, %v1586_v62  ;;  %v1014_v62 = vmul.f32 1.442695, %v993_v14 }
 0x350   : > { %972 = vmax.xlane.f32.xlu1 %v3516_v20  ;;  %1040 = vadd.xlane.f32.xlu0 %v3518_v46  ;;  %v1016_v14 = vmul.f32 1.442695, %v994_v30 }
 0x351   : > { %4285 = vst [vmem:[#allocation5_spill] sm:$0xff] %v3561_v25 }
 0x353   : > { %v3551_v23 = vpop.eup %2624 }
 0x355   : > { %v3553_v12 = vpop.f32.mrf.mxu3 }
 0x357   : > { %1108 = vrot.lane.b32.xlu2 %v2992_v42, %s2891_s26 }
 0x358   : > { %1042 = vadd.xlane.f32.xlu1 %v3522_v7  ;;  %1044 = vadd.xlane.f32.xlu0 %v3524_v60 }
 0x35d   : > { %v1697_v36 = vpop.f32.mrf.mxu3 }
 0x35e   : > { %v3568_v43 = vadd.f32 %v1697_v36, %v1588_v21 }
 0x360   : > { %978 = vmax.xlane.f32.xlu1 %v3533_v16  ;;  %982 = vmax.xlane.f32.xlu0 %v3535_v63 }
 0x365   : > { %v1700_v52 = vpop.f32.mrf.mxu3 }
 0x366   : > { %v3577_v5 = vadd.f32 %v1700_v52, %v1589_v54 }
 0x368   : > { %980 = vmax.xlane.f32.xlu1 %v3545_v56  ;;  %581 = vmax.xlane.f32.xlu0 %v3542_v27 }
 0x36a   : > { %v1037_v9 = vpop.xlane.xlu0 %1036 }
 0x370   : > { %1050 = vadd.xlane.f32.xlu1 %v3551_v23  ;;  %986 = vmax.xlane.f32.xlu0 %v3549_v34 }
 0x372   : > { %v3557_v41 = vpop.xlane.xlu2 %1038 }
 0x378   : > { %984 = vmax.xlane.f32.xlu1 %v3559_v53  ;;  %1732 = vmax.xlane.f32.xlu0 %v3561_v25  ;;  %v3575_v25 = vadd.f32 %v3467_v13, %v821_v10 }
 0x37a   : > { %v654_v35 = vpop.xlane.xlu2 %653 }
 0x37b   : > { %2626 = vrcp.f32 %v654_v35 }
 0x380   : > { %1736 = vmax.xlane.f32.xlu0 %v3568_v43  ;;  %974 = vmax.xlane.f32.xlu2 %v3566_v55 }
 0x381   : > { %v2627_v36 = vpop.eup %2626 }
 0x382   : > { %v656_v6 = vpop.xlane.xlu2 %655  ;;  %v699_v35 = vmul.f32 %v2627_v36, %v3441_v58 }
 0x383   : > { %2628 = vrcp.f32 %v656_v6 }
 0x384   : > { %2630 = vpow2.f32 %v1014_v62  ;;  %v438_v62 = vld [vmem:[#allocation2 + $0x38] sm:$0xff] }
 0x385   : > { %2632 = vpow2.f32 %v1016_v14  ;;  %v3596_v30 = vadd.f32 %v3334_v22, %v438_v62 }
 0x388   : > { %1738 = vmax.xlane.f32.xlu0 %v3577_v5  ;;  %976 = vmax.xlane.f32.xlu2 %v3575_v25 }
 0x389   : > { %v2629_v31 = vpop.eup %2628 }
 0x38a   : > { %v700_v21 = vmul.f32 %v2629_v31, %v3451_v61  ;;  %v3585_v10 = vpop.eup %2630 }
 0x38b   : > { %v658_v6 = vpop.xlane.xlu1 %657  ;;  %v3588_v8 = vpop.eup %2632 }
 0x38c   : > { %v714_v13 = vpack.c.bf16 %v700_v21, %v699_v35  ;;  %2634 = vrcp.f32 %v658_v6 }
 0x38e   : > { %758 = vmatmul.bf16.gmra.mxu0 %v714_v13 }
 0x390   : > { %1046 = vadd.xlane.f32.xlu2 %v3585_v10 }
 0x392   : > { %v660_v4 = vpop.xlane.xlu0 %659  ;;  %v2635_v54 = vpop.eup %2634 }
 0x393   : > { %2636 = vrcp.f32 %v660_v4  ;;  %v701_v61 = vmul.f32 %v2635_v54, %v3459_v57 }
 0x398   : > { %1048 = vadd.xlane.f32.xlu2 %v3588_v8 }
 0x399   : > { %v2637_v58 = vpop.eup %2636 }
 0x39a   : > { %v702_v52 = vmul.f32 %v2637_v58, %v3465_v45  ;;  %v670_v45 = vpop.xlane.xlu0 %669 }
 0x39c   : > { %1896 = vrot.lane.b32.xlu0 %v3004_v50, %s2892_s27  ;;  %v715_v36 = vpack.c.bf16 %v702_v52, %v701_v61 }
 0x39e   : > { %763 = vmatmul.bf16.gmra.mxu0 %v715_v36 }
 0x3a0   : > { %583 = vmax.xlane.f32.xlu2 %v3596_v30 }
 0x3a3   : > { %v668_v31 = vpop.xlane.xlu1 %667 }
 0x3a4   : > { %1507 = vrot.lane.b32.xlu0 %v3002_v49, %s2893_s28  ;;  %2638 = vrcp.f32 %v668_v31 }
 0x3aa   : > { %v666_v57 = vpop.xlane.xlu2 %665  ;;  %v2639_v35 = vpop.eup %2638 }
 0x3ab   : > { %2640 = vrcp.f32 %v666_v57  ;;  %v706_v13 = vmul.f32 %v2639_v35, %v3480_v44  ;;  %v672_v6 = vpop.xlane.xlu1 %671 }
 0x3ac   : > { %1505 = vrot.lane.b32.xlu0 %v2982_v37, %s2893_s28  ;;  %2642 = vrcp.f32 %v3557_v41 }
 0x3ad   : > { %2644 = vrcp.f32 %v1037_v9 }
 0x3ae   : > { %2646 = vrcp.f32 %v672_v6 }
 0x3af   : > { %2648 = vrcp.f32 %v670_v45 }
 0x3b1   : > { %v2641_v21 = vpop.eup %2640 }
 0x3b2   : > { %v680_v22 = vpop.xlane.xlu2 %679  ;;  %v705_v14 = vmul.f32 %v2641_v21, %v3487_v3  ;;  %v2643_v58 = vpop.eup %2642 }
 0x3b3   : > { %v674_v4 = vpop.xlane.xlu0 %673  ;;  %v2645_v61 = vpop.eup %2644  ;;  %v1085_v52 = vmul.f32 %v2643_v58, %v3435_v17 }
 0x3b4   : > { %1892 = vrot.lane.b32.xlu0 %v2982_v37, %s2892_s27  ;;  %v717_v54 = vpack.c.bf16 %v706_v13, %v705_v14  ;;  %v1084_v41 = vmul.f32 %v2645_v61, %v3431_v26  ;;  %v2647_v36 = vpop.eup %2646 }
 0x3b5   : > { %v2649_v37 = vpop.eup %2648  ;;  %v708_v31 = vmul.f32 %v2647_v36, %v3489_v59 }
 0x3b6   : > { %773 = vmatmul.bf16.vlgmr.msra.gmra.mxu2 %v717_v54  ;;  %v1100_v44 = vpack.c.bf16 %v1085_v52, %v1084_v41  ;;  %v707_v57 = vmul.f32 %v2649_v37, %v3473_v40  ;;  %v3615_v54 = vpop.f32.mrf.mxu3 }
 0x3b8   : > { %v718_v26 = vpack.c.bf16 %v708_v31, %v707_v57  ;;  %v1592_v57 = vld [vmem:[#allocation2 + $0x1b8] sm:$0xff] }
 0x3ba   : > { %v1109_v9 = vpop.permute.xlu2 %1108 }
 0x3bb   : > { %v678_v62 = vpop.xlane.xlu0 %677  ;;  %v676_v3 = vpop.xlane.xlu1 %675  ;;  %1139 = vmatpush.bf16.msra.mxu0 %v1109_v9 }
 0x3bc   : > { %1503 = vrot.lane.b32.xlu0 %v2974_v28, %s2893_s28  ;;  %2650 = vrcp.f32 %v676_v3 }
 0x3be   : > { %1140 = vmatmul.bf16.vlgmr.msra.gmra.mxu0 %v1100_v44  ;;  %v3626_v36 = vpop.f32.mrf.mxu3 }
 0x3c2   : > { %v2651_v6 = vpop.eup %2650 }
 0x3c3   : > { %v1041_v35 = vpop.xlane.xlu0 %1040  ;;  %v973_v17 = vpop.xlane.xlu1 %972 }
 0x3c4   : > { %v996_v45 = vsub.f32 %v3516_v20, %v973_v17  ;;  %v710_v20 = vmul.f32 %v2651_v6, %v3505_v0 }
 0x3c6   : > { %v1020_v21 = vmul.f32 1.442695, %v996_v45  ;;  %778 = vmatmul.bf16.gmra.mxu2 %v718_v26 }
 0x3c8   : > { %2652 = vpow2.f32 %v1020_v21 }
 0x3c9   : > { %2654 = vrcp.f32 %v674_v4 }
 0x3ca   : > { %2656 = vrcp.f32 %v1041_v35  ;;  %v1707_v35 = vpop.f32.mrf.mxu3 }
 0x3cb   : > { %v1045_v14 = vpop.xlane.xlu0 %1044  ;;  %v1043_v13 = vpop.xlane.xlu1 %1042 }
 0x3cc   : > { %2658 = vrcp.f32 %v1043_v13 }
 0x3cd   : > { %2660 = vrcp.f32 %v678_v62 }
 0x3ce   : > { %v3617_v59 = vpop.eup %2652  ;;  %2662 = vrcp.f32 %v680_v22 }
 0x3cf   : > { %v2655_v40 = vpop.eup %2654  ;;  %1052 = vadd.xlane.f32.xlu2 %v3617_v59 }
 0x3d0   : > { %v2657_v58 = vpop.eup %2656  ;;  %v709_v61 = vmul.f32 %v2655_v40, %v3497_v47 }
 0x3d1   : > { %v1086_v9 = vmul.f32 %v2657_v58, %v3518_v46  ;;  %v3632_v46 = vadd.f32 %v1707_v35, %v1592_v57 }
 0x3d2   : > { %v2659_v52 = vpop.eup %2658  ;;  %v719_v4 = vpack.c.bf16 %v710_v20, %v709_v61  ;;  %v1585_v61 = vld [vmem:[#allocation2 + $0x180] sm:$0xff] }
 0x3d3   : > { %v3622_v41 = vpop.xlane.xlu0 %982  ;;  %v1087_v3 = vmul.f32 %v2659_v52, %v3522_v7  ;;  %v2661_v37 = vpop.eup %2660 }
 0x3d4   : > { %v2663_v31 = vpop.eup %2662  ;;  %v711_v47 = vmul.f32 %v2661_v37, %v3503_v11  ;;  %v979_v21 = vpop.xlane.xlu1 %978 }
 0x3d5   : > { %v1101_v44 = vpack.c.bf16 %v1087_v3, %v1086_v9  ;;  %v712_v17 = vmul.f32 %v2663_v31, %v3495_v51 }
 0x3d6   : > { %783 = vmatmul.bf16.gmra.mxu2 %v719_v4 }
 0x3d7   : > { %1145 = vmatmul.bf16.gmra.mxu0 %v1101_v44  ;;  %v720_v7 = vpack.c.bf16 %v712_v17, %v711_v47  ;;  %v1001_v17 = vsub.f32 %v3535_v63, %v3622_v41 }
 0x3db   : > { %v3628_v0 = vpop.xlane.xlu0 %581 }
 0x3dc   : > { %v981_v58 = vpop.xlane.xlu1 %980 }
 0x3e3   : > { %v3635_v45 = vpop.xlane.xlu0 %986 }
 0x3e4   : > { %v1051_v35 = vpop.xlane.xlu1 %1050 }
 0x3e6   : > { %1744 = vmax.xlane.f32.xlu0 %v3632_v46  ;;  %788 = vmatmul.bf16.gmra.mxu2 %v720_v7  ;;  %v1030_v7 = vmul.f32 1.442695, %v1001_v17 }
 0x3eb   : > { %v3637_v62 = vpop.xlane.xlu0 %1732 }
 0x3f3   : > { %v975_v22 = vpop.xlane.xlu2 %974  ;;  %v3644_v11 = vpop.xlane.xlu0 %1736 }
 0x3f4   : > { %v997_v26 = vsub.f32 %v3566_v55, %v975_v22  ;;  %v999_v55 = vsub.f32 %v3533_v16, %v979_v21 }
 0x3f6   : > { %v1022_v13 = vmul.f32 1.442695, %v997_v26  ;;  %2481 = vmatmul.msk.bf16.vlgmr.msrb.gmra.mxu2 %vm471_vm1, %v3212_v48  ;;  %v1000_v48 = vsub.f32 %v3545_v56, %v981_v58  ;;  %v1026_v4 = vmul.f32 1.442695, %v999_v55  ;;  %v985_v58 = vpop.xlane.xlu1 %984 }
 0x3f8   : > { %2664 = vpow2.f32 %v1022_v13  ;;  %v1028_v9 = vmul.f32 1.442695, %v1000_v48 }
 0x3fa   : > { %1499 = vrot.lane.b32.xlu0 %v2970_v24, %s2893_s28 }
 0x3fb   : > { %v977_v51 = vpop.xlane.xlu2 %976  ;;  %v3657_v3 = vpop.xlane.xlu0 %1738 }
 0x3fc   : > { %v998_v6 = vsub.f32 %v3575_v25, %v977_v51  ;;  %v3655_v25 = vadd.f32 %v3530_v38, %v1585_v61 }
 0x3fe   : > { %v1024_v40 = vmul.f32 1.442695, %v998_v6  ;;  %v3647_v20 = vpop.eup %2664 }
 0x3ff   : > { %1054 = vadd.xlane.f32.xlu1 %v3647_v20 }
 0x400   : > { %2666 = vpow2.f32 %v1024_v40  ;;  %v1003_v40 = vsub.f32 %v3549_v34, %v3635_v45 }
 0x401   : > { %2668 = vrcp.f32 %v1045_v14 }
 0x402   : > { %1497 = vrot.lane.b32.xlu0 %v2978_v33, %s2893_s28 }
 0x403   : > { %v1047_v52 = vpop.xlane.xlu2 %1046 }
 0x404   : > { %2670 = vrcp.f32 %v1047_v52  ;;  %v1198_v52 = vld [vmem:[#allocation2 + $0x100] sm:$0xff] }
 0x405   : > { %2672 = vpow2.f32 %v1026_v4 }
 0x406   : > { %2482 = vmatmul.msk.bf16.gmra.mxu2 %vm471_vm1, %v3182_v29  ;;  %v3661_v16 = vpop.eup %2666  ;;  %2674 = vpow2.f32 %v1028_v9 }
 0x407   : > { %v2669_v14 = vpop.eup %2668  ;;  %1730 = vmax.xlane.f32.xlu1 %v3655_v25  ;;  %1056 = vadd.xlane.f32.xlu2 %v3661_v16 }
 0x408   : > { %v1088_v38 = vmul.f32 %v2669_v14, %v3524_v60  ;;  %v1587_v60 = vld [vmem:[#allocation2 + $0x190] sm:$0xff] }
 0x409   : > { %v3680_v22 = vadd.f32 %v3553_v12, %v1587_v60 }
 0x40a   : > { %v2671_v56 = vpop.eup %2670  ;;  %1884 = vrot.lane.b32.xlu0 %v2978_v33, %s2892_s27  ;;  %v607_v33 = vsub.f32 %v3542_v27, %v3628_v0 }
 0x40b   : > { %v1089_v44 = vmul.f32 %v2671_v56, %v3585_v10  ;;  %v1049_v37 = vpop.xlane.xlu2 %1048  ;;  %v3669_v47 = vpop.eup %2672  ;;  %v1590_v10 = vld [vmem:[#allocation2 + $0x1a8] sm:$0xff] }
 0x40c   : > { %v3671_v57 = vpop.eup %2674  ;;  %2676 = vrcp.f32 %v1049_v37  ;;  %v629_v26 = vmul.f32 1.442695, %v607_v33  ;;  %v3685_v63 = vadd.f32 %v3615_v54, %v1590_v10  ;;  %v3744_v56 = vpop.f32.mrf.mxu0 }
 0x40d   : > { %v1102_v31 = vpack.c.bf16 %v1089_v44, %v1088_v38  ;;  %2678 = vrcp.f32 %v1051_v35  ;;  %v3754_v33 = vpop.f32.mrf.mxu3 }
 0x40e   : > { %v1897_v29 = vpop.permute.xlu0 %1896  ;;  %2680 = vpow2.f32 %v1030_v7 }
 0x40f   : > { %1906 = vmatpush.bf16.msrb.mxu0 %v1897_v29  ;;  %1058 = vadd.xlane.f32.xlu1 %v3669_v47  ;;  %2682 = vpow2.f32 %v629_v26 }
 0x410   : > { %1150 = vmatmul.bf16.gmra.mxu0 %v1102_v31  ;;  %1060 = vadd.xlane.f32.xlu2 %v3671_v57 }
 0x412   : > { %v2677_v21 = vpop.eup %2676 }
 0x413   : > { %v584_v41 = vpop.xlane.xlu2 %583  ;;  %v2679_v13 = vpop.eup %2678  ;;  %v1090_v12 = vmul.f32 %v2677_v21, %v3588_v8  ;;  %v1594_v21 = vld [vmem:[#allocation2 + $0x1c8] sm:$0xff] }
 0x414   : > { %v608_v27 = vsub.f32 %v3596_v30, %v584_v41  ;;  %v1091_v0 = vmul.f32 %v2679_v13, %v3551_v23  ;;  %v3692_v6 = vpop.eup %2680  ;;  %v1034_v30 = vmul.f32 1.442695, %v1003_v40  ;;  %v3756_v7 = vpop.f32.mrf.mxu0 }
 0x415   : > { %v3694_v54 = vpop.eup %2682  ;;  %v1712_v41 = vpop.f32.mrf.mxu3 }
 0x416   : > { %2483 = vmatmul.msk.bf16.gmra.mxu2 %vm471_vm1, %v3225_v2  ;;  %v631_v51 = vmul.f32 1.442695, %v608_v27  ;;  %v1103_v2 = vpack.c.bf16 %v1091_v0, %v1090_v12  ;;  %v3770_v40 = vadd.f32 %v1712_v41, %v1594_v21 }
 0x417   : > { %1734 = vmax.xlane.f32.xlu1 %v3680_v22 }
 0x418   : > { %1740 = vmax.xlane.f32.xlu2 %v3685_v63  ;;  %2684 = vpow2.f32 %v631_v51 }
 0x419   : > { %2686 = vpow2.f32 %v1034_v30 }
 0x41c   : > { %v3765_v0 = vpop.f32.mrf.mxu0 }
 0x41e   : > { %v3702_v23 = vpop.eup %2684 }
 0x41f   : > { %1062 = vadd.xlane.f32.xlu1 %v3692_v6  ;;  %v3705_v8 = vpop.eup %2686 }
 0x420   : > { %1155 = vmatmul.bf16.gmra.mxu0 %v1103_v2  ;;  %661 = vadd.xlane.f32.xlu2 %v3694_v54 }
 0x426   : > { %2484 = vmatmul.msk.bf16.gmra.mxu2 %vm471_vm1, %v3197_v39 }
 0x428   : > { %663 = vadd.xlane.f32.xlu2 %v3702_v23 }
 0x430   : > { %1066 = vadd.xlane.f32.xlu2 %v3705_v8 }
 0x436   : > { %2485 = vmatmul.msk.bf16.gmra.mxu2 %vm471_vm1, %v3236_v1 }
 0x438   : > { %1509 = vrot.lane.b32.xlu1 %v3004_v50, %s2893_s28  ;;  %v1002_v50 = vsub.f32 %v3559_v53, %v985_v58 }
 0x439   : > { %v3712_v34 = vpop.f32.mrf.mxu2 }
 0x43a   : > { %4286 = vst [vmem:[#allocation6_spill] sm:$0xff] %v3712_v34  ;;  %v1032_v55 = vmul.f32 1.442695, %v1002_v50 }
 0x43c   : > { %2688 = vpow2.f32 %v1032_v55 }
 0x441   : > { %v3714_v45 = vpop.f32.mrf.mxu2 }
 0x442   : > { %4287 = vst [vmem:[#allocation7_spill] sm:$0xff] %v3714_v45  ;;  %v3735_v48 = vpop.eup %2688  ;;  %v1053_v53 = vpop.xlane.xlu2 %1052 }
 0x443   : > { %2690 = vrcp.f32 %v1053_v53  ;;  %v3777_v53 = vpop.f32.mrf.mxu0 }
 0x446   : > { %2486 = vmatmul.msk.bf16.gmra.mxu2 %vm471_vm1, %v3252_v18 }
 0x448   : > { %1894 = vrot.lane.b32.xlu2 %v3002_v49, %s2892_s27 }
 0x449   : > { %v3720_v39 = vpop.f32.mrf.mxu2  ;;  %v2691_v4 = vpop.eup %2690 }
 0x44a   : > { %4288 = vst [vmem:[#allocation8_spill] sm:$0xff] %v3720_v39 }
 0x450   : > { %1890 = vrot.lane.b32.xlu2 %v2974_v28, %s2892_s27 }
 0x451   : > { %v3724_v1 = vpop.f32.mrf.mxu2 }
 0x452   : > { %4289 = vst [vmem:[#allocation9_spill] sm:$0xff] %v3724_v1 }
 0x456   : > { %2487 = vmatmul.msk.bf16.gmra.mxu2 %vm471_vm1, %v3279_v32 }
 0x458   : > { %1888 = vrot.lane.b32.xlu2 %v2966_v19, %s2892_s27 }
 0x459   : > { %v3731_v18 = vpop.f32.mrf.mxu2 }
 0x45a   : > { %4290 = vst [vmem:[#allocation10_spill] sm:$0xff] %v3731_v18  ;;  %v1596_v18 = vld [vmem:[#allocation2 + $0x1d8] sm:$0xff] }
 0x461   : > { %v3733_v49 = vpop.f32.mrf.mxu2 }
 0x462   : > { %4291 = vst [vmem:[#allocation11_spill] sm:$0xff] %v3733_v49  ;;  %1064 = vadd.xlane.f32.xlu1 %v3735_v48 }
 0x466   : > { %2488 = vmatmul.msk.bf16.gmra.mxu2 %vm471_vm1, %v3389_v15  ;;  %v1092_v15 = vmul.f32 %v2691_v4, %v3617_v59 }
 0x469   : > { %v3740_v28 = vpop.f32.mrf.mxu2 }
 0x46a   : > { %4292 = vst [vmem:[#allocation12_spill] sm:$0xff] %v3740_v28 }
 0x471   : > { %v3742_v32 = vpop.f32.mrf.mxu2 }
 0x472   : > { %4293 = vst [vmem:[#allocation13_spill] sm:$0xff] %v3742_v32  ;;  %v1055_v61 = vpop.xlane.xlu1 %1054  ;;  %v1208_v32 = vld [vmem:[#allocation2 + $0x150] sm:$0xff] }
 0x473   : > { %2692 = vrcp.f32 %v1055_v61  ;;  %v1765_v61 = vsub.f32 %v3568_v43, %v3644_v11  ;;  %v3791_v43 = vpop.f32.mrf.mxu0 }
 0x479   : > { %v1303_v9 = vpop.f32.mrf.mxu2  ;;  %v2693_v14 = vpop.eup %2692 }
 0x47a   : > { %v3746_v38 = vadd.f32 %v1303_v9, %v1198_v52  ;;  %v1057_v44 = vpop.xlane.xlu2 %1056  ;;  %v1731_v37 = vpop.xlane.xlu1 %1730  ;;  %v1093_v31 = vmul.f32 %v2693_v14, %v3647_v20  ;;  %v1199_v14 = vld [vmem:[#allocation2 + $0x108] sm:$0xff] }
 0x47b   : > { %v1762_v29 = vsub.f32 %v3655_v25, %v1731_v37  ;;  %1501 = vrot.lane.b32.xlu1 %v2966_v19, %s2893_s28  ;;  %v1508_v52 = vpop.permute.xlu0 %1507 }
 0x47c   : > { %1343 = vmax.xlane.f32.xlu0 %v3746_v38  ;;  %v1104_v35 = vpack.c.bf16 %v1093_v31, %v1092_v15  ;;  %v1784_v15 = vmul.f32 1.442695, %v1765_v61  ;;  %v1203_v61 = vld [vmem:[#allocation2 + $0x128] sm:$0xff] }
 0x47d   : > { %v1778_v17 = vmul.f32 1.442695, %v1762_v29 }
 0x47e   : > { %1160 = vmatmul.bf16.gmra.mxu0 %v1104_v35 }
 0x47f   : > { %2694 = vpow2.f32 %v1778_v17  ;;  %v4294_v17 = vld [vmem:[#allocation5_spill] sm:$0xff] }
 0x480   : > { %2696 = vrcp.f32 %v1057_v44  ;;  %4295 = vst [vmem:[#allocation5_spill] sm:$0xff] %v3791_v43 }
 0x481   : > { %v1305_v60 = vpop.f32.mrf.mxu2 }
 0x482   : > { %v1059_v10 = vpop.xlane.xlu1 %1058  ;;  %v3786_v29 = vadd.f32 %v1305_v60, %v1199_v14  ;;  %v1200_v14 = vld [vmem:[#allocation2 + $0x110] sm:$0xff] }
 0x483   : > { %v1061_v59 = vpop.xlane.xlu2 %1060  ;;  %2698 = vrcp.f32 %v1059_v10  ;;  %v1763_v10 = vsub.f32 %v4294_v17, %v3637_v62  ;;  %v1202_v17 = vld [vmem:[#allocation2 + $0x120] sm:$0xff] }
 0x485   : > { %v3758_v20 = vpop.eup %2694 }
 0x486   : > { %1810 = vadd.xlane.f32.xlu2 %v3758_v20  ;;  %v2697_v19 = vpop.eup %2696 }
 0x487   : > { %v1094_v27 = vmul.f32 %v2697_v19, %v3661_v16 }
 0x489   : > { %v3761_v25 = vpop.f32.mrf.mxu2  ;;  %v2699_v26 = vpop.eup %2698 }
 0x48a   : > { %v1735_v13 = vpop.xlane.xlu1 %1734  ;;  %v1095_v12 = vmul.f32 %v2699_v26, %v3669_v47  ;;  %v1506_v26 = vpop.permute.xlu0 %1505 }
 0x48b   : > { %v3767_v51 = vpop.xlane.xlu2 %1740  ;;  %v1764_v2 = vsub.f32 %v3680_v22, %v1735_v13 }
 0x48c   : > { %v1105_v30 = vpack.c.bf16 %v1095_v12, %v1094_v27 }
 0x48d   : > { %v1782_v58 = vmul.f32 1.442695, %v1764_v2  ;;  %v3804_v2 = vpop.f32.mrf.mxu0 }
 0x48e   : > { %1748 = vmax.xlane.f32.xlu2 %v3770_v40  ;;  %1165 = vmatmul.bf16.gmra.mxu0 %v1105_v30 }
 0x48f   : > { %2700 = vpow2.f32 %v1782_v58 }
 0x490   : > { %1495 = vrot.lane.b32.xlu0 %v2992_v42, %s2893_s28  ;;  %2702 = vrcp.f32 %v1061_v59  ;;  %v1591_v59 = vld [vmem:[#allocation2 + $0x1b0] sm:$0xff] }
 0x491   : > { %v1310_v16 = vpop.f32.mrf.mxu2  ;;  %v3794_v60 = vadd.f32 %v3626_v36, %v1591_v59  ;;  %v1201_v36 = vld [vmem:[#allocation2 + $0x118] sm:$0xff]  ;;  %v1207_v59 = vld [vmem:[#allocation2 + $0x148] sm:$0xff] }
 0x492   : > { %v1063_v47 = vpop.xlane.xlu1 %1062 }
 0x493   : > { %v662_v50 = vpop.xlane.xlu2 %661  ;;  %2704 = vrcp.f32 %v1063_v47 }
 0x494   : > { %2706 = vrcp.f32 %v662_v50 }
 0x495   : > { %v3775_v55 = vpop.eup %2700 }
 0x496   : > { %1814 = vadd.xlane.f32.xlu2 %v3775_v55  ;;  %v2703_v22 = vpop.eup %2702 }
 0x497   : > { %v1096_v44 = vmul.f32 %v2703_v22, %v3671_v57  ;;  %v3812_v22 = vpop.f32.mrf.mxu0 }
 0x499   : > { %v3782_v4 = vpop.f32.mrf.mxu2  ;;  %v2705_v9 = vpop.eup %2704 }
 0x49a   : > { %v1097_v37 = vmul.f32 %v2705_v9, %v3692_v6  ;;  %v2707_v11 = vpop.eup %2706  ;;  %v1780_v6 = vmul.f32 1.442695, %v1763_v10 }
 0x49b   : > { %v664_v31 = vpop.xlane.xlu2 %663  ;;  %v703_v41 = vmul.f32 %v2707_v11, %v3694_v54  ;;  %v1893_v54 = vpop.permute.xlu0 %1892  ;;  %v3827_v11 = vadd.f32 %v3782_v4, %v1202_v17 }
 0x49c   : > { %2708 = vrcp.f32 %v664_v31  ;;  %v1106_v35 = vpack.c.bf16 %v1097_v37, %v1096_v44 }
 0x49d   : > { %2710 = vpow2.f32 %v1784_v15 }
 0x49e   : > { %1345 = vmax.xlane.f32.xlu2 %v3786_v29  ;;  %1170 = vmatmul.bf16.gmra.mxu0 %v1106_v35  ;;  %2712 = vpow2.f32 %v1780_v6 }
 0x49f   : > { %v3821_v31 = vpop.f32.mrf.mxu0 }
 0x4a1   : > { %v1315_v57 = vpop.f32.mrf.mxu2 }
 0x4a2   : > { %v2709_v19 = vpop.eup %2708  ;;  %v3814_v44 = vadd.f32 %v1315_v57, %v1203_v61 }
 0x4a3   : > { %v3796_v21 = vpop.xlane.xlu2 %1066  ;;  %v704_v62 = vmul.f32 %v2709_v19, %v3702_v23  ;;  %v3800_v13 = vpop.eup %2710  ;;  %v3808_v23 = vadd.f32 %v1310_v16, %v1201_v36  ;;  %v3818_v16 = vadd.f32 %v3761_v25, %v1200_v14  ;;  %v1204_v19 = vld [vmem:[#allocation2 + $0x130] sm:$0xff]  ;;  %v1206_v36 = vld [vmem:[#allocation2 + $0x140] sm:$0xff] }
 0x4a4   : > { %v3806_v47 = vpop.eup %2712  ;;  %v1504_v37 = vpop.permute.xlu0 %1503  ;;  %2714 = vrcp.f32 %v3796_v21 }
 0x4a5   : > { %1742 = vmax.xlane.f32.xlu1 %v3794_v60  ;;  %v716_v27 = vpack.c.bf16 %v704_v62, %v703_v41  ;;  %v1595_v41 = vld [vmem:[#allocation2 + $0x1d0] sm:$0xff]  ;;  %v1715_v62 = vpop.f32.mrf.mxu3 }
 0x4a6   : > { %1816 = vadd.xlane.f32.xlu2 %v3800_v13 }
 0x4a7   : > { %768 = vmatmul.bf16.vlgmr.msrb.gmra.mxu1 %v716_v27  ;;  %v3830_v57 = vpop.f32.mrf.mxu0  ;;  %v3842_v27 = vadd.f32 %v1715_v62, %v1595_v41  ;;  %v1593_v41 = vld [vmem:[#allocation2 + $0x1c0] sm:$0xff] }
 0x4a9   : > { %v1318_v12 = vpop.f32.mrf.mxu2 }
 0x4aa   : > { %v1510_v30 = vpop.permute.xlu1 %1509 }
 0x4ab   : > { %v1895_v58 = vpop.permute.xlu2 %1894  ;;  %1519 = vmatpush.bf16.msra.mxu1 %v1510_v30 }
 0x4ac   : > { %1907 = vmatpush.bf16.msrb.mxu0 %v1895_v58  ;;  %v3840_v4 = vpop.xlane.xlu0 %1744 }
 0x4ad   : > { %1812 = vadd.xlane.f32.xlu1 %v3806_v47  ;;  %v1717_v49 = vpop.f32.mrf.mxu3 }
 0x4ae   : > { %1349 = vmax.xlane.f32.xlu2 %v3808_v23  ;;  %v3918_v39 = vadd.f32 %v1717_v49, %v1596_v18  ;;  %v1769_v49 = vsub.f32 %v3632_v46, %v3840_v4 }
 0x4af   : > { %1520 = vmatpush.bf16.msra.mxu1 %v1508_v52  ;;  %v1205_v52 = vld [vmem:[#allocation2 + $0x138] sm:$0xff]  ;;  %v3844_v30 = vpop.f32.mrf.mxu0 }
 0x4b0   : > { %1908 = vmatpush.bf16.msrb.mxu0 %v1893_v54 }
 0x4b1   : > { %v1320_v50 = vpop.f32.mrf.mxu2 }
 0x4b2   : > { %v3823_v10 = vadd.f32 %v1320_v50, %v1205_v52  ;;  %v2715_v50 = vpop.eup %2714 }
 0x4b3   : > { %v1891_v9 = vpop.permute.xlu2 %1890  ;;  %1521 = vmatpush.bf16.msra.mxu1 %v1506_v26  ;;  %v3837_v26 = vadd.f32 %v1318_v12, %v1204_v19 }
 0x4b4   : > { %1909 = vmatpush.bf16.msrb.mxu0 %v1891_v9  ;;  %v1500_v12 = vpop.permute.xlu0 %1499 }
 0x4b6   : > { %1353 = vmax.xlane.f32.xlu2 %v3814_v44 }
 0x4b7   : > { %1522 = vmatpush.bf16.msra.mxu1 %v1504_v37  ;;  %v3853_v58 = vpop.f32.mrf.mxu0 }
 0x4b9   : > { %v1323_v15 = vpop.f32.mrf.mxu2 }
 0x4ba   : > { %1347 = vmax.xlane.f32.xlu0 %v3818_v16 }
 0x4bb   : > { %v1889_v35 = vpop.permute.xlu2 %1888 }
 0x4bc   : > { %1910 = vmatpush.bf16.msrb.mxu0 %v1889_v35  ;;  %v1498_v9 = vpop.permute.xlu0 %1497 }
 0x4be   : > { %1357 = vmax.xlane.f32.xlu2 %v3823_v10 }
 0x4bf   : > { %v3857_v37 = vpop.f32.mrf.mxu0 }
 0x4c1   : > { %v1325_v25 = vpop.f32.mrf.mxu2 }
 0x4c2   : > { %1351 = vmax.xlane.f32.xlu0 %v3827_v11  ;;  %v3832_v6 = vadd.f32 %v1325_v25, %v1207_v59 }
 0x4c4   : > { %v3859_v52 = vpop.permute.xlu0 %1884 }
 0x4c6   : > { %1886 = vrot.lane.b32.xlu1 %v2970_v24, %s2892_s27  ;;  %1361 = vmax.xlane.f32.xlu2 %v3832_v6  ;;  %v3849_v24 = vadd.f32 %v1323_v15, %v1206_v36  ;;  %v1767_v36 = vsub.f32 %v3685_v63, %v3767_v51 }
 0x4c7   : > { %v3861_v35 = vpop.f32.mrf.mxu0 }
 0x4c9   : > { %v1328_v25 = vpop.f32.mrf.mxu2 }
 0x4ca   : > { %1355 = vmax.xlane.f32.xlu0 %v3837_v26 }
 0x4ce   : > { %1882 = vrot.lane.b32.xlu1 %v2992_v42, %s2892_s27  ;;  %1750 = vmax.xlane.f32.xlu2 %v3842_v27  ;;  %v1099_v42 = vmul.f32 %v2715_v50, %v3705_v8  ;;  %v3867_v8 = vadd.f32 %v3754_v33, %v1593_v41 }
 0x4d2   : > { %1359 = vmax.xlane.f32.xlu0 %v3849_v24 }
 0x4d5   : > { %v1065_v54 = vpop.xlane.xlu1 %1064 }
 0x4d6   : > { %2716 = vrcp.f32 %v1065_v54 }
 0x4dc   : > { %v2717_v61 = vpop.eup %2716 }
 0x4dd   : > { %v1098_v14 = vmul.f32 %v2717_v61, %v3735_v48  ;;  %v3864_v48 = vpop.f32.mrf.mxu0  ;;  %v1788_v61 = vmul.f32 1.442695, %v1767_v36 }
 0x4df   : > { %v1107_v15 = vpack.c.bf16 %v1099_v42, %v1098_v14 }
 0x4e1   : > { %1175 = vmatmul.bf16.gmra.mxu0 %v1107_v15 }
 0x4ed   : > { %v1502_v21 = vpop.permute.xlu1 %1501 }
 0x4ee   : > { %1523 = vmatpush.bf16.msra.mxu1 %v1502_v21 }
 0x4ef   : > { %v1344_v17 = vpop.xlane.xlu0 %1343 }
 0x4f0   : > { %v1375_v59 = vsub.f32 %v3746_v38, %v1344_v17  ;;  %v1209_v38 = vld [vmem:[#allocation2 + $0x158] sm:$0xff] }
 0x4f2   : > { %v1391_v19 = vmul.f32 1.442695, %v1375_v59  ;;  %1524 = vmatpush.bf16.msra.mxu1 %v1500_v12  ;;  %v1330_v12 = vpop.f32.mrf.mxu2 }
 0x4f3   : > { %v3877_v14 = vadd.f32 %v1330_v12, %v1209_v38 }
 0x4f4   : > { %2718 = vpow2.f32 %v1391_v19 }
 0x4f5   : > { %2720 = vpow2.f32 %v1788_v61 }
 0x4f6   : > { %1525 = vmatpush.bf16.msra.mxu1 %v1498_v9 }
 0x4f8   : > { %1746 = vmax.xlane.f32.xlu1 %v3867_v8 }
 0x4f9   : > { %v3874_v54 = vpop.xlane.xlu2 %1810 }
 0x4fa   : > { %v3870_v62 = vpop.eup %2718 }
 0x4fb   : > { %1423 = vadd.xlane.f32.xlu0 %v3870_v62  ;;  %v1161_v50 = vpop.f32.mrf.mxu0  ;;  %v3886_v17 = vpop.eup %2720 }
 0x4fc   : > { %v1189_v42 = vpack.c.bf16 %v1161_v50, %v1161_v50 }
 0x4fe   : > { %v3882_v51 = vunpack.c.l.b16 %v1189_v42 }
 0x500   : > { %1365 = vmax.xlane.f32.xlu1 %v3877_v14 }
 0x501   : > { %v3880_v33 = vpop.xlane.xlu2 %1748 }
 0x502   : > { %v1496_v9 = vpop.permute.xlu0 %1495 }
 0x503   : > { %1526 = vmatpush.bf16.msra.mxu1 %v1496_v9  ;;  %v1163_v15 = vpop.f32.mrf.mxu0 }
 0x504   : > { %v1190_v63 = vpack.c.bf16 %v1163_v15, %v1163_v15 }
 0x506   : > { %v3884_v21 = vunpack.c.l.b16 %v1190_v63 }
 0x508   : > { %1820 = vadd.xlane.f32.xlu1 %v3886_v17 }
 0x509   : > { %v3891_v19 = vpop.xlane.xlu2 %1814 }
 0x50b   : > { %v1166_v41 = vpop.f32.mrf.mxu0 }
 0x50c   : > { %v1191_v38 = vpack.c.bf16 %v1166_v41, %v1166_v41 }
 0x50e   : > { %v3894_v42 = vunpack.c.l.b16 %v1191_v38 }
 0x511   : > { %v1346_v36 = vpop.xlane.xlu2 %1345 }
 0x512   : > { %v1376_v12 = vsub.f32 %v3786_v29, %v1346_v36  ;;  %v3905_v36 = vadd.f32 %v1328_v25, %v1208_v32 }
 0x513   : > { %v1168_v50 = vpop.f32.mrf.mxu0 }
 0x514   : > { %v1393_v61 = vmul.f32 1.442695, %v1376_v12  ;;  %v1192_v9 = vpack.c.bf16 %v1168_v50, %v1168_v50  ;;  %v1766_v50 = vsub.f32 %v3577_v5, %v3657_v3  ;;  %v1333_v5 = vpop.f32.mrf.mxu2 }
 0x516   : > { %2722 = vpow2.f32 %v1393_v61  ;;  %v3896_v15 = vunpack.c.l.b16 %v1192_v9  ;;  %v1786_v32 = vmul.f32 1.442695, %v1766_v50 }
 0x518   : > { %v3910_v61 = vpop.xlane.xlu1 %1742  ;;  %2724 = vpow2.f32 %v1786_v32 }
 0x519   : > { %v3903_v41 = vpop.xlane.xlu2 %1816 }
 0x51b   : > { %v1171_v59 = vpop.f32.mrf.mxu0 }
 0x51c   : > { %v3900_v28 = vpop.eup %2722  ;;  %v1193_v29 = vpack.c.bf16 %v1171_v59, %v1171_v59  ;;  %v1335_v32 = vpop.f32.mrf.mxu2 }
 0x51d   : > { %1425 = vadd.xlane.f32.xlu0 %v3900_v28 }
 0x51e   : > { %v3912_v9 = vunpack.c.l.b16 %v1193_v29  ;;  %v3923_v34 = vpop.eup %2724 }
 0x520   : > { %v1813_v29 = vpop.xlane.xlu1 %1812 }
 0x521   : > { %v1350_v25 = vpop.xlane.xlu2 %1349 }
 0x523   : > { %v1173_v12 = vpop.f32.mrf.mxu0 }
 0x524   : > { %v1194_v38 = vpack.c.bf16 %v1173_v12, %v1173_v12 }
 0x525   : > { %1363 = vmax.xlane.f32.xlu0 %v3905_v36 }
 0x526   : > { %v3914_v63 = vunpack.c.l.b16 %v1194_v38  ;;  %v1378_v38 = vsub.f32 %v3808_v23, %v1350_v25  ;;  %v1211_v23 = vld [vmem:[#allocation2 + $0x168] sm:$0xff] }
 0x528   : > { %v1397_v45 = vmul.f32 1.442695, %v1378_v38 }
 0x529   : > { %v1354_v59 = vpop.xlane.xlu2 %1353 }
 0x52d   : > { %v1348_v12 = vpop.xlane.xlu0 %1347  ;;  %1752 = vmax.xlane.f32.xlu0 %v3918_v39 }
 0x52e   : > { %v1377_v1 = vsub.f32 %v3818_v16, %v1348_v12  ;;  %v1792_v12 = vmul.f32 1.442695, %v1769_v49 }
 0x530   : > { %v1395_v3 = vmul.f32 1.442695, %v1377_v1 }
 0x532   : > { %2726 = vpow2.f32 %v1395_v3  ;;  %v3933_v3 = vadd.f32 %v1335_v32, %v1211_v23 }
 0x533   : > { %2728 = vrcp.f32 %v1813_v29  ;;  %v1720_v29 = vpop.f32.mrf.mxu3 }
 0x534   : > { %2730 = vrcp.f32 %v3874_v54  ;;  %v1358_v54 = vpop.xlane.xlu2 %1357 }
 0x535   : > { %v1352_v50 = vpop.xlane.xlu0 %1351  ;;  %1818 = vadd.xlane.f32.xlu0 %v3923_v34  ;;  %2732 = vpow2.f32 %v1397_v45 }
 0x536   : > { %v1379_v18 = vsub.f32 %v3827_v11, %v1352_v50 }
 0x538   : > { %v3929_v16 = vpop.eup %2726  ;;  %v1399_v1 = vmul.f32 1.442695, %v1379_v18  ;;  %v1887_v25 = vpop.permute.xlu1 %1886 }
 0x539   : > { %1427 = vadd.xlane.f32.xlu2 %v3929_v16  ;;  %1911 = vmatpush.bf16.msrb.mxu0 %v1887_v25  ;;  %v2729_v11 = vpop.eup %2728 }
 0x53a   : > { %2734 = vpow2.f32 %v1399_v1  ;;  %v2731_v46 = vpop.eup %2730  ;;  %v1859_v45 = vmul.f32 %v2729_v11, %v3806_v47  ;;  %v1380_v1 = vsub.f32 %v3814_v44, %v1354_v59  ;;  %v1597_v47 = vld [vmem:[#allocation2 + $0x1e0] sm:$0xff] }
 0x53b   : > { %v3937_v4 = vpop.eup %2732  ;;  %2736 = vpow2.f32 %v1792_v12  ;;  %v1858_v49 = vmul.f32 %v2731_v46, %v3758_v20  ;;  %v1210_v12 = vld [vmem:[#allocation2 + $0x160] sm:$0xff]  ;;  %v3952_v44 = vadd.f32 %v1720_v29, %v1597_v47  ;;  %v1722_v59 = vpop.f32.mrf.mxu3 }
 0x53c   : > { %2738 = vrcp.f32 %v3903_v41  ;;  %v1362_v46 = vpop.xlane.xlu2 %1361 }
 0x53d   : > { %v1356_v38 = vpop.xlane.xlu0 %1355  ;;  %1369 = vmax.xlane.f32.xlu0 %v3933_v3  ;;  %1912 = vmatpush.bf16.msrb.mxu0 %v3859_v52  ;;  %v1382_v52 = vsub.f32 %v3823_v10, %v1358_v54  ;;  %v1874_v32 = vpack.c.bf16 %v1859_v45, %v1858_v49 }
 0x53e   : > { %v1381_v50 = vsub.f32 %v3837_v26, %v1356_v38  ;;  %v1401_v26 = vmul.f32 1.442695, %v1380_v1  ;;  %v3954_v38 = vadd.f32 %v1333_v5, %v1210_v12  ;;  %v1384_v5 = vsub.f32 %v3832_v6, %v1362_v46  ;;  %v1212_v6 = vld [vmem:[#allocation2 + $0x170] sm:$0xff] }
 0x53f   : > { %v1405_v20 = vmul.f32 1.442695, %v1382_v52 }
 0x540   : > { %v3941_v18 = vpop.eup %2734  ;;  %v1883_v23 = vpop.permute.xlu1 %1882  ;;  %v1403_v25 = vmul.f32 1.442695, %v1381_v50  ;;  %v1599_v50 = vld [vmem:[#allocation2 + $0x1f0] sm:$0xff]  ;;  %v1409_v52 = vmul.f32 1.442695, %v1384_v5 }
 0x541   : > { %1431 = vadd.xlane.f32.xlu1 %v3941_v18  ;;  %1429 = vadd.xlane.f32.xlu2 %v3937_v4  ;;  %v3948_v11 = vpop.eup %2736 }
 0x542   : > { %1913 = vmatpush.bf16.msrb.mxu0 %v1883_v23  ;;  %2740 = vpow2.f32 %v1403_v25  ;;  %v2739_v10 = vpop.eup %2738  ;;  %v1768_v23 = vsub.f32 %v3794_v60, %v3910_v61  ;;  %v1598_v25 = vld [vmem:[#allocation2 + $0x1e8] sm:$0xff] }
 0x543   : > { %2742 = vrcp.f32 %v3891_v19  ;;  %v1861_v54 = vmul.f32 %v2739_v10, %v3800_v13  ;;  %v1725_v49 = vpop.f32.mrf.mxu3  ;;  %v1338_v13 = vpop.f32.mrf.mxu2 }
 0x544   : > { %2744 = vpow2.f32 %v1401_v26  ;;  %v3973_v47 = vadd.f32 %v1725_v49, %v1599_v50  ;;  %v1790_v12 = vmul.f32 1.442695, %v1768_v23  ;;  %v3976_v26 = vadd.f32 %v1722_v59, %v1598_v25 }
 0x545   : > { %1914 = vmatmul.bf16.vlgmr.msrb.gmra.mxu0 %v1874_v32  ;;  %1824 = vadd.xlane.f32.xlu0 %v3948_v11  ;;  %2746 = vpow2.f32 %v1405_v20  ;;  %v3978_v20 = vadd.f32 %v1338_v13, %v1212_v6  ;;  %v1360_v46 = vpop.xlane.xlu0 %1359  ;;  %v1771_v25 = vsub.f32 %v3770_v40, %v3880_v33 }
 0x546   : > { %2748 = vpow2.f32 %v1409_v52  ;;  %v1383_v5 = vsub.f32 %v3849_v24, %v1360_v46  ;;  %v1751_v46 = vpop.xlane.xlu2 %1750 }
 0x547   : > { %2750 = vpow2.f32 %v1790_v12  ;;  %v1772_v40 = vsub.f32 %v3842_v27, %v1751_v46 }
 0x548   : > { %v3959_v41 = vpop.eup %2740  ;;  %v1407_v49 = vmul.f32 1.442695, %v1383_v5 }
 0x549   : > { %1754 = vmax.xlane.f32.xlu1 %v3952_v44  ;;  %1367 = vmax.xlane.f32.xlu2 %v3954_v38  ;;  %v2743_v45 = vpop.eup %2742 }
 0x54a   : > { %v3962_v29 = vpop.eup %2744  ;;  %v1860_v1 = vmul.f32 %v2743_v45, %v3775_v55  ;;  %v1600_v55 = vld [vmem:[#allocation2 + $0x1f8] sm:$0xff]  ;;  %2752 = vpow2.f32 %v1407_v49 }
 0x54b   : > { %v3966_v19 = vpop.eup %2746  ;;  %v1727_v60 = vpop.f32.mrf.mxu3 }
 0x54c   : > { %v1875_v32 = vpack.c.bf16 %v1861_v54, %v1860_v1  ;;  %v3982_v61 = vpop.eup %2748  ;;  %v3985_v10 = vadd.f32 %v1727_v60, %v1600_v55  ;;  %v1213_v54 = vld [vmem:[#allocation2 + $0x178] sm:$0xff]  ;;  %v1340_v50 = vpop.f32.mrf.mxu2  ;;  %v1796_v60 = vmul.f32 1.442695, %v1771_v25 }
 0x54d   : > { %1435 = vadd.xlane.f32.xlu0 %v3959_v41  ;;  %v3987_v59 = vpop.eup %2750  ;;  %v3992_v23 = vadd.f32 %v1340_v50, %v1213_v54  ;;  %v1798_v50 = vmul.f32 1.442695, %v1772_v40 }
 0x550   : > { %v4004_v5 = vpop.eup %2752 }
 0x551   : > { %1433 = vadd.xlane.f32.xlu2 %v3962_v29  ;;  %1437 = vadd.xlane.f32.xlu1 %v3966_v19 }
 0x555   : > { %1919 = vmatmul.bf16.gmra.mxu0 %v1875_v32  ;;  %1758 = vmax.xlane.f32.xlu0 %v3973_v47 }
 0x559   : > { %1756 = vmax.xlane.f32.xlu2 %v3976_v26  ;;  %1371 = vmax.xlane.f32.xlu1 %v3978_v20 }
 0x55d   : > { %1441 = vadd.xlane.f32.xlu0 %v3982_v61 }
 0x55e   : > { %v1176_v45 = vpop.f32.mrf.mxu0 }
 0x55f   : > { %v1195_v1 = vpack.c.bf16 %v1176_v45, %v1176_v45 }
 0x561   : > { %1760 = vmax.xlane.f32.xlu1 %v3985_v10  ;;  %1822 = vadd.xlane.f32.xlu2 %v3987_v59  ;;  %v3997_v6 = vunpack.c.l.b16 %v1195_v1 }
 0x566   : > { %v1178_v52 = vpop.f32.mrf.mxu0 }
 0x567   : > { %v1196_v32 = vpack.c.bf16 %v1178_v52, %v1178_v52 }
 0x569   : > { %1373 = vmax.xlane.f32.xlu2 %v3992_v23  ;;  %v3999_v13 = vunpack.c.l.b16 %v1196_v32 }
 0x56b   : > { %v1747_v12 = vpop.xlane.xlu1 %1746 }
 0x56c   : > { %v1770_v55 = vsub.f32 %v3867_v8, %v1747_v12 }
 0x56e   : > { %v1794_v45 = vmul.f32 1.442695, %v1770_v55  ;;  %v1424_v27 = vpop.xlane.xlu0 %1423 }
 0x570   : > { %2754 = vpow2.f32 %v1794_v45 }
 0x571   : > { %1439 = vadd.xlane.f32.xlu2 %v4004_v5  ;;  %2756 = vpow2.f32 %v1796_v60 }
 0x573   : > { %v1366_v33 = vpop.xlane.xlu1 %1365 }
 0x574   : > { %v1386_v54 = vsub.f32 %v3877_v14, %v1366_v33 }
 0x576   : > { %v4009_v49 = vpop.eup %2754  ;;  %v1413_v1 = vmul.f32 1.442695, %v1386_v54 }
 0x577   : > { %v4011_v52 = vpop.eup %2756  ;;  %1826 = vadd.xlane.f32.xlu1 %v4009_v49 }
 0x578   : > { %2758 = vpow2.f32 %v1413_v1 }
 0x579   : > { %1828 = vadd.xlane.f32.xlu2 %v4011_v52  ;;  %2760 = vpow2.f32 %v1798_v50 }
 0x57a   : > { %2762 = vrcp.f32 %v1424_v27 }
 0x57e   : > { %v4015_v8 = vpop.eup %2758 }
 0x57f   : > { %v4017_v32 = vpop.eup %2760  ;;  %1445 = vadd.xlane.f32.xlu1 %v4015_v8 }
 0x580   : > { %v2763_v25 = vpop.eup %2762 }
 0x581   : > { %1830 = vadd.xlane.f32.xlu2 %v4017_v32  ;;  %v1471_v55 = vmul.f32 %v2763_v25, %v3870_v62 }
 0x590   : > { %v1426_v14 = vpop.xlane.xlu0 %1425 }
 0x591   : > { %2764 = vrcp.f32 %v1426_v14  ;;  %v1821_v14 = vpop.xlane.xlu1 %1820 }
 0x597   : > { %v2765_v12 = vpop.eup %2764 }
 0x598   : > { %v1472_v60 = vmul.f32 %v2765_v12, %v3900_v28  ;;  %v1364_v46 = vpop.xlane.xlu0 %1363 }
 0x599   : > { %v1385_v45 = vsub.f32 %v3905_v36, %v1364_v46 }
 0x59a   : > { %v1487_v40 = vpack.c.bf16 %v1472_v60, %v1471_v55 }
 0x59b   : > { %v1411_v33 = vmul.f32 1.442695, %v1385_v45 }
 0x59c   : > { %1527 = vmatmul.bf16.vlgmr.msra.gmra.mxu1 %v1487_v40 }
 0x59d   : > { %2766 = vpow2.f32 %v1411_v33 }
 0x5a0   : > { %v1753_v54 = vpop.xlane.xlu0 %1752 }
 0x5a1   : > { %v1773_v50 = vsub.f32 %v3918_v39, %v1753_v54 }
 0x5a3   : > { %v4025_v1 = vpop.eup %2766  ;;  %v1800_v27 = vmul.f32 1.442695, %v1773_v50 }
 0x5a4   : > { %1443 = vadd.xlane.f32.xlu0 %v4025_v1 }
 0x5a5   : > { %2768 = vpow2.f32 %v1800_v27 }
 0x5a6   : > { %2770 = vrcp.f32 %v1821_v14 }
 0x5a8   : > { %v1819_v62 = vpop.xlane.xlu0 %1818 }
 0x5a9   : > { %2772 = vrcp.f32 %v1819_v62 }
 0x5ab   : > { %v4028_v28 = vpop.eup %2768 }
 0x5ac   : > { %v1428_v36 = vpop.xlane.xlu2 %1427  ;;  %1832 = vadd.xlane.f32.xlu0 %v4028_v28  ;;  %v2771_v25 = vpop.eup %2770 }
 0x5ad   : > { %v1863_v60 = vmul.f32 %v2771_v25, %v3886_v17  ;;  %2774 = vrcp.f32 %v1428_v36 }
 0x5af   : > { %v2773_v12 = vpop.eup %2772 }
 0x5b0   : > { %v1370_v55 = vpop.xlane.xlu0 %1369  ;;  %v1862_v39 = vmul.f32 %v2773_v12, %v3923_v34 }
 0x5b1   : > { %v1388_v46 = vsub.f32 %v3933_v3, %v1370_v55 }
 0x5b2   : > { %v1876_v45 = vpack.c.bf16 %v1863_v60, %v1862_v39 }
 0x5b3   : > { %v1417_v40 = vmul.f32 1.442695, %v1388_v46  ;;  %v2775_v50 = vpop.eup %2774 }
 0x5b4   : > { %v1430_v33 = vpop.xlane.xlu2 %1429  ;;  %v1432_v54 = vpop.xlane.xlu1 %1431  ;;  %1924 = vmatmul.bf16.gmra.mxu0 %v1876_v45  ;;  %v1473_v34 = vmul.f32 %v2775_v50, %v3929_v16 }
 0x5b5   : > { %2776 = vrcp.f32 %v1430_v33 }
 0x5b6   : > { %2778 = vpow2.f32 %v1417_v40 }
 0x5b8   : > { %v1825_v27 = vpop.xlane.xlu0 %1824 }
 0x5bb   : > { %v2777_v14 = vpop.eup %2776 }
 0x5bc   : > { %v4034_v62 = vpop.eup %2778  ;;  %v1368_v24 = vpop.xlane.xlu2 %1367  ;;  %v1474_v17 = vmul.f32 %v2777_v14, %v3937_v4 }
 0x5bd   : > { %v1755_v43 = vpop.xlane.xlu1 %1754  ;;  %v1387_v3 = vsub.f32 %v3954_v38, %v1368_v24  ;;  %1449 = vadd.xlane.f32.xlu2 %v4034_v62 }
 0x5be   : > { %v1774_v36 = vsub.f32 %v3952_v44, %v1755_v43  ;;  %v1488_v25 = vpack.c.bf16 %v1474_v17, %v1473_v34 }
 0x5bf   : > { %v1415_v12 = vmul.f32 1.442695, %v1387_v3 }
 0x5c0   : > { %v1802_v55 = vmul.f32 1.442695, %v1774_v36  ;;  %1532 = vmatmul.bf16.gmra.mxu1 %v1488_v25  ;;  %v1436_v39 = vpop.xlane.xlu0 %1435 }
 0x5c1   : > { %2780 = vpow2.f32 %v1415_v12 }
 0x5c2   : > { %2782 = vpow2.f32 %v1802_v55 }
 0x5c3   : > { %2784 = vrcp.f32 %v1432_v54 }
 0x5c4   : > { %v1434_v60 = vpop.xlane.xlu2 %1433 }
 0x5c5   : > { %v1438_v46 = vpop.xlane.xlu1 %1437  ;;  %2786 = vrcp.f32 %v1434_v60 }
 0x5c6   : > { %2788 = vrcp.f32 %v1825_v27 }
 0x5c7   : > { %v4041_v16 = vpop.eup %2780  ;;  %2790 = vrcp.f32 %v1438_v46 }
 0x5c8   : > { %v4043_v4 = vpop.eup %2782  ;;  %1447 = vadd.xlane.f32.xlu1 %v4041_v16  ;;  %v1759_v33 = vpop.xlane.xlu0 %1758 }
 0x5c9   : > { %v2785_v38 = vpop.eup %2784  ;;  %1834 = vadd.xlane.f32.xlu0 %v4043_v4  ;;  %v1776_v3 = vsub.f32 %v3973_v47, %v1759_v33 }
 0x5ca   : > { %v1475_v45 = vmul.f32 %v2785_v38, %v3941_v18 }
 0x5cb   : > { %v2787_v43 = vpop.eup %2786  ;;  %v1806_v36 = vmul.f32 1.442695, %v1776_v3 }
 0x5cc   : > { %v1757_v44 = vpop.xlane.xlu2 %1756  ;;  %v1476_v40 = vmul.f32 %v2787_v43, %v3962_v29  ;;  %v2789_v29 = vpop.eup %2788 }
 0x5cd   : > { %v1372_v24 = vpop.xlane.xlu1 %1371  ;;  %v1775_v54 = vsub.f32 %v3976_v26, %v1757_v44  ;;  %v2791_v12 = vpop.eup %2790  ;;  %v1865_v43 = vmul.f32 %v2789_v29, %v3948_v11 }
 0x5ce   : > { %v1389_v50 = vsub.f32 %v3978_v20, %v1372_v24  ;;  %v1489_v14 = vpack.c.bf16 %v1476_v40, %v1475_v45 }
 0x5cf   : > { %v1804_v34 = vmul.f32 1.442695, %v1775_v54 }
 0x5d0   : > { %v1419_v17 = vmul.f32 1.442695, %v1389_v50  ;;  %1537 = vmatmul.bf16.gmra.mxu1 %v1489_v14  ;;  %v1442_v50 = vpop.xlane.xlu0 %1441 }
 0x5d1   : > { %2792 = vpow2.f32 %v1804_v34 }
 0x5d2   : > { %2794 = vpow2.f32 %v1419_v17 }
 0x5d3   : > { %2796 = vrcp.f32 %v1436_v39  ;;  %v1478_v39 = vmul.f32 %v2791_v12, %v3966_v19  ;;  %v1182_v12 = vpack.c.bf16 %v3821_v31, %v3821_v31  ;;  %v1185_v31 = vpack.c.bf16 %v3853_v58, %v3853_v58 }
 0x5d4   : > { %v1823_v18 = vpop.xlane.xlu2 %1822  ;;  %v1188_v58 = vpack.c.bf16 %v3864_v48, %v3864_v48  ;;  %v4296_v48 = vpack.c.b16 %v3884_v21, %v3882_v51 }
 0x5d5   : > { %v1761_v25 = vpop.xlane.xlu1 %1760  ;;  %2798 = vrcp.f32 %v1823_v18 }
 0x5d6   : > { %v1777_v26 = vsub.f32 %v3985_v10, %v1761_v25  ;;  %2800 = vpow2.f32 %v1806_v36 }
 0x5d7   : > { %v4053_v20 = vpop.eup %2792 }
 0x5d8   : > { %v1808_v27 = vmul.f32 1.442695, %v1777_v26  ;;  %v4055_v55 = vpop.eup %2794  ;;  %1836 = vadd.xlane.f32.xlu1 %v4053_v20 }
 0x5d9   : > { %v2797_v47 = vpop.eup %2796  ;;  %1451 = vadd.xlane.f32.xlu2 %v4055_v55 }
 0x5da   : > { %2802 = vpow2.f32 %v1808_v27  ;;  %v1477_v38 = vmul.f32 %v2797_v47, %v3959_v41  ;;  %v1915_v41 = vpop.f32.mrf.mxu0 }
 0x5db   : > { %v2799_v60 = vpop.eup %2798  ;;  %v1955_v29 = vpack.c.bf16 %v1915_v41, %v1915_v41  ;;  %v1187_v41 = vpack.c.bf16 %v3861_v35, %v3861_v35 }
 0x5dc   : > { %v1374_v46 = vpop.xlane.xlu2 %1373  ;;  %v1864_v10 = vmul.f32 %v2799_v60, %v3987_v59  ;;  %v4064_v24 = vpop.eup %2800  ;;  %v1490_v45 = vpack.c.bf16 %v1478_v39, %v1477_v38  ;;  %v1181_v39 = vpack.c.bf16 %v3812_v22, %v3812_v22 }
 0x5dd   : > { %v1390_v44 = vsub.f32 %v3992_v23, %v1374_v46  ;;  %v2139_v46 = vunpack.c.l.b16 %v1955_v29 }
 0x5de   : > { %v1877_v40 = vpack.c.bf16 %v1865_v43, %v1864_v10  ;;  %v1186_v10 = vpack.c.bf16 %v3857_v37, %v3857_v37  ;;  %v2031_v37 = vunpack.c.l.b16 %v1185_v31 }
 0x5df   : > { %v1421_v54 = vmul.f32 1.442695, %v1390_v44  ;;  %v2027_v44 = vunpack.c.l.b16 %v1181_v39 }
 0x5e0   : > { %v4066_v33 = vpop.eup %2802  ;;  %1838 = vadd.xlane.f32.xlu1 %v4064_v24  ;;  %1542 = vmatmul.bf16.gmra.mxu1 %v1490_v45  ;;  %v1183_v45 = vpack.c.bf16 %v3830_v57, %v3830_v57  ;;  %v2033_v57 = vunpack.c.l.b16 %v1187_v41 }
 0x5e1   : > { %2804 = vpow2.f32 %v1421_v54  ;;  %1929 = vmatmul.bf16.gmra.mxu0 %v1877_v40  ;;  %1840 = vadd.xlane.f32.xlu2 %v4066_v33 }
 0x5e2   : > { %2806 = vrcp.f32 %v1442_v50  ;;  %v1917_v34 = vpop.f32.mrf.mxu0  ;;  %v2029_v50 = vunpack.c.l.b16 %v1183_v45 }
 0x5e3   : > { %v1956_v25 = vpack.c.bf16 %v1917_v34, %v1917_v34 }
 0x5e4   : > { %v1440_v11 = vpop.xlane.xlu2 %1439 }
 0x5e5   : > { %2808 = vrcp.f32 %v1440_v11  ;;  %v2140_v47 = vunpack.c.l.b16 %v1956_v25  ;;  %v2034_v11 = vunpack.c.l.b16 %v1188_v58 }
 0x5e7   : > { %v4070_v19 = vpop.eup %2804  ;;  %v2155_v43 = vpack.c.b16 %v2140_v47, %v2139_v46 }
 0x5e8   : > { %1453 = vadd.xlane.f32.xlu0 %v4070_v19  ;;  %v2807_v59 = vpop.eup %2806 }
 0x5e9   : > { %v1480_v36 = vmul.f32 %v2807_v59, %v3982_v61  ;;  %v2028_v61 = vunpack.c.l.b16 %v1182_v12  ;;  %v2046_v59 = vpack.c.b16 %v2034_v11, %v2033_v57 }
 0x5ea   : > { %v1827_v14 = vpop.xlane.xlu1 %1826 }
 0x5eb   : > { %v2809_v23 = vpop.eup %2808  ;;  %2810 = vrcp.f32 %v1827_v14  ;;  %v2043_v22 = vpack.c.b16 %v2028_v61, %v2027_v44 }
 0x5ec   : > { %v1829_v17 = vpop.xlane.xlu2 %1828  ;;  %v1479_v3 = vmul.f32 %v2809_v23, %v4004_v5  ;;  %v4097_v23 = vpop.f32.mrf.mxu1 }
 0x5ed   : > { %2812 = vrcp.f32 %v1829_v17  ;;  %v4297_v17 = vpack.c.b16 %v3896_v15, %v3894_v42 }
 0x5ee   : > { %v1491_v18 = vpack.c.bf16 %v1480_v36, %v1479_v3  ;;  %v1920_v3 = vpop.f32.mrf.mxu0 }
 0x5f0   : > { %1547 = vmatmul.bf16.gmra.mxu1 %v1491_v18 }
 0x5f1   : > { %v2811_v26 = vpop.eup %2810 }
 0x5f2   : > { %v1866_v60 = vmul.f32 %v2811_v26, %v4009_v49  ;;  %v1184_v49 = vpack.c.bf16 %v3844_v30, %v3844_v30  ;;  %v1446_v35 = vpop.xlane.xlu1 %1445 }
 0x5f3   : > { %v2813_v27 = vpop.eup %2812  ;;  %2814 = vrcp.f32 %v1446_v35 }
 0x5f4   : > { %v1867_v5 = vmul.f32 %v2813_v27, %v4011_v52  ;;  %v2032_v52 = vunpack.c.l.b16 %v1186_v10  ;;  %v2030_v40 = vunpack.c.l.b16 %v1184_v49  ;;  %v4104_v14 = vpop.f32.mrf.mxu1  ;;  %v1831_v18 = vpop.xlane.xlu2 %1830  ;;  %v4298_v27 = vpack.c.b16 %v3914_v63, %v3912_v9 }
 0x5f5   : > { %v4299_v63 = vpack.c.b16 %v3999_v13, %v3997_v6 }
 0x5f6   : > { %v1878_v38 = vpack.c.bf16 %v1867_v5, %v1866_v60  ;;  %v2045_v54 = vpack.c.b16 %v2032_v52, %v2031_v37  ;;  %v2044_v30 = vpack.c.b16 %v2030_v40, %v2029_v50  ;;  %v1922_v39 = vpop.f32.mrf.mxu0 }
 0x5f8   : > { %1934 = vmatmul.bf16.gmra.mxu0 %v1878_v38  ;;  %v1958_v38 = vpack.c.bf16 %v1922_v39, %v1922_v39 }
 0x5f9   : > { %2163 = vrot.lane.b32.xlu2 %v2155_v43, %s2894_s29  ;;  %v2815_v25 = vpop.eup %2814  ;;  %v1957_v43 = vpack.c.bf16 %v1920_v3, %v1920_v3 }
 0x5fa   : > { %v1482_v21 = vmul.f32 %v2815_v25, %v4015_v8  ;;  %v2142_v44 = vunpack.c.l.b16 %v1958_v38 }
 0x5fb   : > { %v2141_v31 = vunpack.c.l.b16 %v1957_v43 }
 0x5fc   : > { %2051 = vrot.lane.b32.xlu0 %v2043_v22, %s2895_s7 }
 0x5fd   : > { %v2156_v22 = vpack.c.b16 %v2142_v44, %v2141_v31 }
 0x601   : > { %2055 = vrot.lane.b32.xlu2 %v2045_v54, %s2895_s7 }
 0x604   : > { %2053 = vrot.lane.b32.xlu0 %v2044_v30, %s2895_s7 }
 0x609   : > { %2057 = vrot.lane.b32.xlu2 %v2046_v59, %s2895_s7 }
 0x611   : > { %2059 = vrot.lane.b32.xlu2 %v4296_v48, %s2895_s7 }
 0x617   : > { %v1444_v34 = vpop.xlane.xlu0 %1443 }
 0x618   : > { %2816 = vrcp.f32 %v1444_v34 }
 0x619   : > { %2061 = vrot.lane.b32.xlu2 %v4297_v17, %s2895_s7  ;;  %v1528_v36 = vpop.f32.mrf.mxu1  ;;  %2818 = vrcp.f32 %v1831_v18 }
 0x61a   : > { %v1568_v12 = vpack.c.bf16 %v1528_v36, %v1528_v36 }
 0x61c   : > { %v2083_v5 = vunpack.c.l.b16 %v1568_v12 }
 0x61e   : > { %v2817_v29 = vpop.eup %2816 }
 0x61f   : > { %v1833_v26 = vpop.xlane.xlu0 %1832  ;;  %v1481_v51 = vmul.f32 %v2817_v29, %v4025_v1  ;;  %v2819_v60 = vpop.eup %2818 }
 0x620   : > { %2820 = vrcp.f32 %v1833_v26  ;;  %v1868_v8 = vmul.f32 %v2819_v60, %v4017_v32 }
 0x621   : > { %2063 = vrot.lane.b32.xlu2 %v4298_v27, %s2895_s7  ;;  %v1530_v42 = vpop.f32.mrf.mxu1  ;;  %v1492_v15 = vpack.c.bf16 %v1482_v21, %v1481_v51 }
 0x622   : > { %v1569_v47 = vpack.c.bf16 %v1530_v42, %v1530_v42 }
 0x623   : > { %1552 = vmatmul.bf16.gmra.mxu1 %v1492_v15 }
 0x624   : > { %v2084_v46 = vunpack.c.l.b16 %v1569_v47 }
 0x626   : > { %v2821_v61 = vpop.eup %2820  ;;  %v2099_v1 = vpack.c.b16 %v2084_v46, %v2083_v5 }
 0x627   : > { %v1869_v10 = vmul.f32 %v2821_v61, %v4028_v28 }
 0x628   : > { %2107 = vrot.lane.b32.xlu1 %v2099_v1, %s2896_s8 }
 0x629   : > { %2065 = vrot.lane.b32.xlu2 %v4299_v63, %s2895_s7  ;;  %v1879_v9 = vpack.c.bf16 %v1869_v10, %v1868_v8 }
 0x62b   : > { %1939 = vmatmul.bf16.gmra.mxu0 %v1879_v9 }
 0x630   : > { %2165 = vrot.lane.b32.xlu1 %v2156_v22, %s2894_s29  ;;  %v1450_v32 = vpop.xlane.xlu2 %1449 }
 0x631   : > { %v1925_v49 = vpop.f32.mrf.mxu0  ;;  %2822 = vrcp.f32 %v1450_v32 }
 0x632   : > { %v1959_v52 = vpack.c.bf16 %v1925_v49, %v1925_v49 }
 0x634   : > { %v2143_v40 = vunpack.c.l.b16 %v1959_v52 }
 0x637   : > { %v2823_v13 = vpop.eup %2822 }
 0x638   : > { %v1484_v30 = vmul.f32 %v2823_v13, %v4034_v62 }
 0x639   : > { %v1927_v28 = vpop.f32.mrf.mxu0 }
 0x63a   : > { %v1960_v45 = vpack.c.bf16 %v1927_v28, %v1927_v28 }
 0x63b   : > { %v1448_v37 = vpop.xlane.xlu1 %1447 }
 0x63c   : > { %2824 = vrcp.f32 %v1448_v37  ;;  %v2144_v54 = vunpack.c.l.b16 %v1960_v45  ;;  %v1835_v35 = vpop.xlane.xlu0 %1834 }
 0x63d   : > { %v1533_v58 = vpop.f32.mrf.mxu1  ;;  %2826 = vrcp.f32 %v1835_v35 }
 0x63e   : > { %v2157_v6 = vpack.c.b16 %v2144_v54, %v2143_v40  ;;  %v1570_v11 = vpack.c.bf16 %v1533_v58, %v1533_v58  ;;  %v2525_v58 = vld [vmem:[%s4281_s4] sm:$0xff] }
 0x640   : > { %2167 = vrot.lane.b32.xlu1 %v2157_v6, %s2894_s29  ;;  %v2085_v34 = vunpack.c.l.b16 %v1570_v11 }
 0x642   : > { %v2825_v50 = vpop.eup %2824 }
 0x643   : > { %v1483_v41 = vmul.f32 %v2825_v50, %v4041_v16  ;;  %v2827_v29 = vpop.eup %2826 }
 0x644   : > { %v1870_v62 = vmul.f32 %v2827_v29, %v4043_v4 }
 0x645   : > { %v1535_v57 = vpop.f32.mrf.mxu1  ;;  %v1493_v59 = vpack.c.bf16 %v1484_v30, %v1483_v41 }
 0x646   : > { %v1571_v48 = vpack.c.bf16 %v1535_v57, %v1535_v57 }
 0x647   : > { %1557 = vmatmul.bf16.gmra.mxu1 %v1493_v59 }
 0x648   : > { %v2086_v17 = vunpack.c.l.b16 %v1571_v48 }
 0x64a   : > { %v2100_v3 = vpack.c.b16 %v2086_v17, %v2085_v34 }
 0x64b   : > { %v1837_v36 = vpop.xlane.xlu1 %1836 }
 0x64c   : > { %v1452_v18 = vpop.xlane.xlu2 %1451  ;;  %2828 = vrcp.f32 %v1837_v36  ;;  %2109 = vrot.lane.b32.xlu0 %v2100_v3, %s2896_s8  ;;  %v795_v36 = vpack.c.bf16 %v3756_v7, %v3756_v7 }
 0x64d   : > { %v1538_v25 = vpop.f32.mrf.mxu1 }
 0x64e   : > { %v1572_v51 = vpack.c.bf16 %v1538_v25, %v1538_v25  ;;  %v1988_v25 = vunpack.c.l.b16 %v795_v36 }
 0x650   : > { %v2087_v47 = vunpack.c.l.b16 %v1572_v51 }
 0x652   : > { %v2829_v16 = vpop.eup %2828 }
 0x653   : > { %v1871_v26 = vmul.f32 %v2829_v16, %v4053_v20  ;;  %v1839_v21 = vpop.xlane.xlu1 %1838 }
 0x654   : > { %v1841_v12 = vpop.xlane.xlu2 %1840  ;;  %2830 = vrcp.f32 %v1839_v21 }
 0x655   : > { %v1540_v27 = vpop.f32.mrf.mxu1  ;;  %v1880_v42 = vpack.c.bf16 %v1871_v26, %v1870_v62  ;;  %2832 = vrcp.f32 %v1841_v12 }
 0x656   : > { %v1573_v15 = vpack.c.bf16 %v1540_v27, %v1540_v27  ;;  %2834 = vrcp.f32 %v1452_v18  ;;  %v794_v18 = vpack.c.bf16 %v3744_v56, %v3744_v56 }
 0x657   : > { %1944 = vmatmul.bf16.gmra.mxu0 %v1880_v42 }
 0x658   : > { %v2088_v39 = vunpack.c.l.b16 %v1573_v15  ;;  %v1987_v29 = vunpack.c.l.b16 %v794_v18 }
 0x65a   : > { %v2101_v60 = vpack.c.b16 %v2088_v39, %v2087_v47  ;;  %v2831_v4 = vpop.eup %2830  ;;  %v2003_v62 = vpack.c.b16 %v1988_v25, %v1987_v29 }
 0x65b   : > { %v1454_v5 = vpop.xlane.xlu0 %1453  ;;  %v2833_v20 = vpop.eup %2832  ;;  %v1872_v1 = vmul.f32 %v2831_v4, %v4064_v24 }
 0x65c   : > { %2836 = vrcp.f32 %v1454_v5  ;;  %2111 = vrot.lane.b32.xlu0 %v2101_v60, %s2896_s8  ;;  %v2835_v38 = vpop.eup %2834  ;;  %v1873_v8 = vmul.f32 %v2833_v20, %v4066_v33  ;;  %v2164_v21 = vpop.permute.xlu2 %2163 }
 0x65d   : > { %v1543_v46 = vpop.f32.mrf.mxu1  ;;  %v1485_v43 = vmul.f32 %v2835_v38, %v4055_v55 }
 0x65e   : > { %v1930_v61 = vpop.f32.mrf.mxu0  ;;  %v1574_v9 = vpack.c.bf16 %v1543_v46, %v1543_v46  ;;  %v1881_v49 = vpack.c.bf16 %v1873_v8, %v1872_v1  ;;  %v796_v8 = vpack.c.bf16 %v3765_v0, %v3765_v0  ;;  %v799_v0 = vpack.c.bf16 %v3804_v2, %v3804_v2 }
 0x65f   : > { %v1961_v44 = vpack.c.bf16 %v1930_v61, %v1930_v61  ;;  %v797_v61 = vpack.c.bf16 %v3777_v53, %v3777_v53 }
 0x660   : > { %v2089_v45 = vunpack.c.l.b16 %v1574_v9  ;;  %v1989_v9 = vunpack.c.l.b16 %v796_v8 }
 0x661   : > { %v2145_v24 = vunpack.c.l.b16 %v1961_v44 }
 0x662   : > { %v2837_v10 = vpop.eup %2836 }
 0x663   : > { %v1486_v63 = vmul.f32 %v2837_v10, %v4070_v19  ;;  %v2526_v19 = vld [vmem:[%s4281_s4 + $0x8] sm:$0xff] }
 0x664   : > { %2279 = vmatpush.bf16.msra.mxu2 %v2526_v19 }
 0x665   : > { %v1545_v31 = vpop.f32.mrf.mxu1  ;;  %v1494_v22 = vpack.c.bf16 %v1486_v63, %v1485_v43  ;;  %v1990_v63 = vunpack.c.l.b16 %v797_v61 }
 0x666   : > { %v1575_v32 = vpack.c.bf16 %v1545_v31, %v1545_v31  ;;  %v1932_v52 = vpop.f32.mrf.mxu0 }
 0x667   : > { %v1962_v28 = vpack.c.bf16 %v1932_v52, %v1932_v52  ;;  %1562 = vmatmul.bf16.gmra.mxu1 %v1494_v22  ;;  %1949 = vmatmul.bf16.gmra.mxu0 %v1881_v49  ;;  %v2004_v44 = vpack.c.b16 %v1990_v63, %v1989_v9 }
 0x668   : > { %v2090_v37 = vunpack.c.l.b16 %v1575_v32  ;;  %2280 = vmatpush.bf16.msra.mxu2 %v2525_v58 }
 0x669   : > { %v2146_v40 = vunpack.c.l.b16 %v1962_v28  ;;  %v4300_v28 = vld [vmem:[#allocation5_spill] sm:$0xff] }
 0x66a   : > { %v2102_v33 = vpack.c.b16 %v2090_v37, %v2089_v45  ;;  %v798_v45 = vpack.c.bf16 %v4300_v28, %v4300_v28  ;;  %v1992_v37 = vunpack.c.l.b16 %v799_v0  ;;  %v4195_v0 = vld [vmem:[%s4282_s5] ss:$0 sm:$0xff] }
 0x66b   : > { %v2158_v54 = vpack.c.b16 %v2146_v40, %v2145_v24  ;;  %v2056_v40 = vpop.permute.xlu2 %2055 }
 0x66c   : > { %2113 = vrot.lane.b32.xlu0 %v2102_v33, %s2896_s8  ;;  %v1991_v24 = vunpack.c.l.b16 %v798_v45  ;;  %v4304_v45 = vld [vmem:[#allocation8_spill] sm:$0xff] }
 0x66d   : > { %2169 = vrot.lane.b32.xlu1 %v2158_v54, %s2894_s29  ;;  %v1548_v55 = vpop.f32.mrf.mxu1 }
 0x66e   : > { %v1576_v6 = vpack.c.bf16 %v1548_v55, %v1548_v55  ;;  %v2052_v16 = vpop.permute.xlu0 %2051  ;;  %v2005_v54 = vpack.c.b16 %v1992_v37, %v1991_v24  ;;  %v804_v37 = vpack.c.bf16 %v4304_v45, %v4304_v45 }
 0x66f   : > { %v2181_v26 = vsel %vm471_vm1, %v2003_v62, %v2052_v16 }
 0x670   : > { %v2091_v30 = vunpack.c.l.b16 %v1576_v6  ;;  %v2187_v58 = vsel %vm471_vm1, %v2005_v54, %v2056_v40  ;;  %v1997_v54 = vunpack.c.l.b16 %v804_v37 }
 0x675   : > { %v1550_v13 = vpop.f32.mrf.mxu1  ;;  %v1935_v50 = vpop.f32.mrf.mxu0 }
 0x676   : > { %v1577_v41 = vpack.c.bf16 %v1550_v13, %v1550_v13  ;;  %v1963_v59 = vpack.c.bf16 %v1935_v50, %v1935_v50  ;;  %v2054_v10 = vpop.permute.xlu0 %2053 }
 0x677   : > { %v2184_v31 = vsel %vm471_vm1, %v2004_v44, %v2054_v10 }
 0x678   : > { %v2092_v11 = vunpack.c.l.b16 %v1577_v41  ;;  %v2147_v34 = vunpack.c.l.b16 %v1963_v59 }
 0x67a   : > { %v2103_v57 = vpack.c.b16 %v2092_v11, %v2091_v30 }
 0x67c   : > { %2115 = vrot.lane.b32.xlu0 %v2103_v57, %s2896_s8  ;;  %v801_v57 = vpack.c.bf16 %v4104_v14, %v4104_v14 }
 0x67d   : > { %v1937_v48 = vpop.f32.mrf.mxu0 }
 0x67e   : > { %v1964_v35 = vpack.c.bf16 %v1937_v48, %v1937_v48  ;;  %v800_v48 = vpack.c.bf16 %v4097_v23, %v4097_v23 }
 0x680   : > { %v2148_v17 = vunpack.c.l.b16 %v1964_v35  ;;  %v1994_v35 = vunpack.c.l.b16 %v801_v57 }
 0x682   : > { %v2159_v3 = vpack.c.b16 %v2148_v17, %v2147_v34  ;;  %v1993_v34 = vunpack.c.l.b16 %v800_v48  ;;  %v2058_v17 = vpop.permute.xlu2 %2057 }
 0x684   : > { %2171 = vrot.lane.b32.xlu1 %v2159_v3, %s2894_s29  ;;  %v2006_v36 = vpack.c.b16 %v1994_v35, %v1993_v34  ;;  %v4306_v35 = vld [vmem:[#allocation10_spill] sm:$0xff] }
 0x685   : > { %v806_v34 = vpack.c.bf16 %v4306_v35, %v4306_v35 }
 0x686   : > { %v2190_v29 = vsel %vm471_vm1, %v2006_v36, %v2058_v17 }
 0x68a   : > { %v2060_v9 = vpop.permute.xlu2 %2059 }
 0x69a   : > { %v2108_v51 = vpop.permute.xlu1 %2107 }
 0x69b   : > { %v2205_v12 = vsel %vm2203_vm2, %v2181_v26, %v2108_v51 }
 0x69c   : > { %v2222_v27 = vsel %vm2220_vm3, %v2205_v12, %v2164_v21 }
 0x69d   : > { %2505 = vmatmul.msk.bf16.vlgmr.msra.gmra.mxu2 %vm349_vm0, %v2222_v27 }
 0x6a0   : > { %v1553_v7 = vpop.f32.mrf.mxu1 }
 0x6a1   : > { %v1578_v42 = vpack.c.bf16 %v1553_v7, %v1553_v7  ;;  %v4301_v7 = vld [vmem:[#allocation7_spill] sm:$0xff] }
 0x6a2   : > { %v2166_v49 = vpop.permute.xlu1 %2165 }
 0x6a3   : > { %v2093_v39 = vunpack.c.l.b16 %v1578_v42  ;;  %v803_v42 = vpack.c.bf16 %v4301_v7, %v4301_v7 }
 0x6a8   : > { %v1555_v15 = vpop.f32.mrf.mxu1  ;;  %v1940_v56 = vpop.f32.mrf.mxu0 }
 0x6a9   : > { %v1579_v47 = vpack.c.bf16 %v1555_v15, %v1555_v15  ;;  %v1965_v4 = vpack.c.bf16 %v1940_v56, %v1940_v56 }
 0x6ab   : > { %v2094_v60 = vunpack.c.l.b16 %v1579_v47  ;;  %v2149_v38 = vunpack.c.l.b16 %v1965_v4 }
 0x6ad   : > { %v2104_v5 = vpack.c.b16 %v2094_v60, %v2093_v39  ;;  %v4302_v60 = vld [vmem:[#allocation6_spill] sm:$0xff] }
 0x6af   : > { %2117 = vrot.lane.b32.xlu0 %v2104_v5, %s2896_s8  ;;  %v802_v5 = vpack.c.bf16 %v4302_v60, %v4302_v60 }
 0x6b0   : > { %v1942_v46 = vpop.f32.mrf.mxu0 }
 0x6b1   : > { %v1966_v20 = vpack.c.bf16 %v1942_v46, %v1942_v46  ;;  %v1995_v10 = vunpack.c.l.b16 %v802_v5 }
 0x6b2   : > { %v2168_v13 = vpop.permute.xlu1 %2167 }
 0x6b3   : > { %v2150_v1 = vunpack.c.l.b16 %v1966_v20  ;;  %v1996_v20 = vunpack.c.l.b16 %v803_v42  ;;  %v4308_v42 = vld [vmem:[#allocation12_spill] sm:$0xff] }
 0x6b5   : > { %v2160_v43 = vpack.c.b16 %v2150_v1, %v2149_v38  ;;  %v2007_v44 = vpack.c.b16 %v1996_v20, %v1995_v10 }
 0x6b7   : > { %2173 = vrot.lane.b32.xlu1 %v2160_v43, %s2894_s29 }
 0x6be   : > { %v2110_v22 = vpop.permute.xlu0 %2109 }
 0x6bf   : > { %v2207_v32 = vsel %vm2203_vm2, %v2184_v31, %v2110_v22  ;;  %v2193_v22 = vsel %vm471_vm1, %v2007_v44, %v2060_v9 }
 0x6c0   : > { %v2224_v53 = vsel %vm2220_vm3, %v2207_v32, %v2166_v49 }
 0x6c1   : > { %2506 = vmatmul.msk.bf16.gmra.mxu2 %vm349_vm0, %v2224_v53 }
 0x6c4   : > { %v1558_v52 = vpop.f32.mrf.mxu1 }
 0x6c5   : > { %v1580_v33 = vpack.c.bf16 %v1558_v52, %v1558_v52  ;;  %v4303_v52 = vld [vmem:[#allocation9_spill] sm:$0xff] }
 0x6c6   : > { %v805_v28 = vpack.c.bf16 %v4303_v52, %v4303_v52 }
 0x6c7   : > { %v2095_v50 = vunpack.c.l.b16 %v1580_v33 }
 0x6c8   : > { %v1998_v33 = vunpack.c.l.b16 %v805_v28 }
 0x6cc   : > { %v1560_v55 = vpop.f32.mrf.mxu1 }
 0x6cd   : > { %v1581_v19 = vpack.c.bf16 %v1560_v55, %v1560_v55  ;;  %v2062_v55 = vpop.permute.xlu2 %2061 }
 0x6ce   : > { %v2112_v6 = vpop.permute.xlu0 %2111 }
 0x6cf   : > { %v2096_v41 = vunpack.c.l.b16 %v1581_v19  ;;  %v2209_v30 = vsel %vm2203_vm2, %v2187_v58, %v2112_v6  ;;  %v2008_v19 = vpack.c.b16 %v1998_v33, %v1997_v54 }
 0x6d0   : > { %v2226_v2 = vsel %vm2220_vm3, %v2209_v30, %v2168_v13 }
 0x6d1   : > { %v2105_v11 = vpack.c.b16 %v2096_v41, %v2095_v50  ;;  %2507 = vmatmul.msk.bf16.gmra.mxu2 %vm349_vm0, %v2226_v2  ;;  %v2196_v6 = vsel %vm471_vm1, %v2008_v19, %v2062_v55 }
 0x6d3   : > { %2119 = vrot.lane.b32.xlu0 %v2105_v11, %s2896_s8 }
 0x6d4   : > { %v1945_v59 = vpop.f32.mrf.mxu0 }
 0x6d5   : > { %v1967_v3 = vpack.c.bf16 %v1945_v59, %v1945_v59  ;;  %v4305_v59 = vld [vmem:[#allocation11_spill] sm:$0xff] }
 0x6d6   : > { %v807_v48 = vpack.c.bf16 %v4305_v59, %v4305_v59 }
 0x6d7   : > { %v2151_v62 = vunpack.c.l.b16 %v1967_v3 }
 0x6d8   : > { %v2000_v36 = vunpack.c.l.b16 %v807_v48 }
 0x6dc   : > { %v1947_v18 = vpop.f32.mrf.mxu0 }
 0x6dd   : > { %v1968_v25 = vpack.c.bf16 %v1947_v18, %v1947_v18  ;;  %v1999_v18 = vunpack.c.l.b16 %v806_v34 }
 0x6de   : > { %v2114_v16 = vpop.permute.xlu0 %2113 }
 0x6df   : > { %v2152_v26 = vunpack.c.l.b16 %v1968_v25  ;;  %v2211_v51 = vsel %vm2203_vm2, %v2190_v29, %v2114_v16  ;;  %v2170_v21 = vpop.permute.xlu1 %2169  ;;  %v2064_v25 = vpop.permute.xlu2 %2063  ;;  %v2009_v29 = vpack.c.b16 %v2000_v36, %v1999_v18 }
 0x6e0   : > { %v2228_v14 = vsel %vm2220_vm3, %v2211_v51, %v2170_v21 }
 0x6e1   : > { %v2161_v12 = vpack.c.b16 %v2152_v26, %v2151_v62  ;;  %2508 = vmatmul.msk.bf16.gmra.mxu2 %vm349_vm0, %v2228_v14  ;;  %v2199_v62 = vsel %vm471_vm1, %v2009_v29, %v2064_v25 }
 0x6e3   : > { %2175 = vrot.lane.b32.xlu1 %v2161_v12, %s2894_s29 }
 0x6e4   : > { %v1563_v23 = vpop.f32.mrf.mxu1  ;;  %v1950_v27 = vpop.f32.mrf.mxu0 }
 0x6e5   : > { %v1582_v15 = vpack.c.bf16 %v1563_v23, %v1563_v23  ;;  %v1969_v56 = vpack.c.bf16 %v1950_v27, %v1950_v27  ;;  %v4307_v23 = vld [vmem:[#allocation13_spill] sm:$0xff] }
 0x6e6   : > { %v809_v27 = vpack.c.bf16 %v4307_v23, %v4307_v23 }
 0x6e7   : > { %v2097_v61 = vunpack.c.l.b16 %v1582_v15  ;;  %v2153_v38 = vunpack.c.l.b16 %v1969_v56  ;;  %v808_v15 = vpack.c.bf16 %v4308_v42, %v4308_v42  ;;  %v2066_v60 = vpop.permute.xlu2 %2065 }
 0x6ec   : > { %v1565_v47 = vpop.f32.mrf.mxu1  ;;  %v1952_v39 = vpop.f32.mrf.mxu0 }
 0x6ed   : > { %v1583_v4 = vpack.c.bf16 %v1565_v47, %v1565_v47  ;;  %v1970_v46 = vpack.c.bf16 %v1952_v39, %v1952_v39  ;;  %v2002_v47 = vunpack.c.l.b16 %v809_v27  ;;  %v2001_v39 = vunpack.c.l.b16 %v808_v15 }
 0x6ee   : > { %v2116_v31 = vpop.permute.xlu0 %2115 }
 0x6ef   : > { %v2098_v1 = vunpack.c.l.b16 %v1583_v4  ;;  %v2154_v8 = vunpack.c.l.b16 %v1970_v46  ;;  %v2213_v49 = vsel %vm2203_vm2, %v2193_v22, %v2116_v31  ;;  %v2010_v5 = vpack.c.b16 %v2002_v47, %v2001_v39 }
 0x6f1   : > { %v2106_v43 = vpack.c.b16 %v2098_v1, %v2097_v61  ;;  %v2162_v63 = vpack.c.b16 %v2154_v8, %v2153_v38  ;;  %v2202_v46 = vsel %vm471_vm1, %v2010_v5, %v2066_v60 }
 0x6f3   : > { %2121 = vrot.lane.b32.xlu0 %v2106_v43, %s2896_s8  ;;  %2177 = vrot.lane.b32.xlu1 %v2162_v63, %s2894_s29 }
 0x6f6   : > { %v2172_v32 = vpop.permute.xlu1 %2171 }
 0x6f7   : > { %v2230_v53 = vsel %vm2220_vm3, %v2213_v49, %v2172_v32 }
 0x6f8   : > { %2509 = vmatmul.msk.bf16.gmra.mxu2 %vm349_vm0, %v2230_v53 }
 0x720   : > { %v2282_v24 = vpop.f32.mrf.mxu2 }
 0x721   : > { %v2283_v40 = vadd.f32 %v4195_v0, %v2282_v24  ;;  %v2118_v58 = vpop.permute.xlu0 %2117 }
 0x722   : > { %v2215_v50 = vsel %vm2203_vm2, %v2196_v6, %v2118_v58 }
 0x723   : > { %2322 = vst.msk [vmem:[%s4204_s18] sm:$0xff] %vm349_vm0, %v2283_v40 }
 0x728   : > { %v2284_v13 = vpop.f32.mrf.mxu2 }
 0x729   : > { %v2285_v41 = vadd.f32 %v4195_v0, %v2284_v13  ;;  %v2174_v30 = vpop.permute.xlu1 %2173 }
 0x72a   : > { %v2232_v2 = vsel %vm2220_vm3, %v2215_v50, %v2174_v30 }
 0x72b   : > { %2323 = vst.msk [vmem:[%s4204_s18 + $0x8] sm:$0xff] %vm349_vm0, %v2285_v41  ;;  %2510 = vmatmul.msk.bf16.gmra.mxu2 %vm349_vm0, %v2232_v2 }
 0x744   : > { %v2287_v11 = vpop.f32.mrf.mxu2 }
 0x745   : > { %v2288_v57 = vadd.f32 %v4195_v0, %v2287_v11  ;;  %v2120_v16 = vpop.permute.xlu0 %2119 }
 0x746   : > { %v2217_v51 = vsel %vm2203_vm2, %v2199_v62, %v2120_v16 }
 0x747   : > { %2324 = vst.msk [vmem:[%s4204_s18 + $0x10] sm:$0xff] %vm349_vm0, %v2288_v57 }
 0x74c   : > { %v2289_v17 = vpop.f32.mrf.mxu2 }
 0x74d   : > { %v2290_v3 = vadd.f32 %v4195_v0, %v2289_v17 }
 0x74f   : > { %2325 = vst.msk [vmem:[%s4204_s18 + $0x18] sm:$0xff] %vm349_vm0, %v2290_v3 }
 0x754   : > { %v2292_v26 = vpop.f32.mrf.mxu2 }
 0x755   : > { %v2293_v21 = vadd.f32 %v4195_v0, %v2292_v26  ;;  %v2176_v14 = vpop.permute.xlu1 %2175 }
 0x756   : > { %v2234_v12 = vsel %vm2220_vm3, %v2217_v51, %v2176_v14 }
 0x757   : > { %2326 = vst.msk [vmem:[%s4204_s18 + $0x20] sm:$0xff] %vm349_vm0, %v2293_v21  ;;  %2511 = vmatmul.msk.bf16.gmra.mxu2 %vm349_vm0, %v2234_v12 }
 0x75c   : > { %v2294_v7 = vpop.f32.mrf.mxu2 }
 0x75d   : > { %v2295_v56 = vadd.f32 %v4195_v0, %v2294_v7 }
 0x75f   : > { %2327 = vst.msk [vmem:[%s4204_s18 + $0x28] sm:$0xff] %vm349_vm0, %v2295_v56 }
 0x764   : > { %v2297_v4 = vpop.f32.mrf.mxu2 }
 0x765   : > { %v2298_v20 = vadd.f32 %v4195_v0, %v2297_v4  ;;  %v2122_v61 = vpop.permute.xlu0 %2121  ;;  %v2178_v38 = vpop.permute.xlu1 %2177 }
 0x766   : > { %v2219_v1 = vsel %vm2203_vm2, %v2202_v46, %v2122_v61 }
 0x767   : > { %2328 = vst.msk [vmem:[%s4204_s18 + $0x30] sm:$0xff] %vm349_vm0, %v2298_v20  ;;  %v2236_v8 = vsel %vm2220_vm3, %v2219_v1, %v2178_v38 }
 0x768   : > { %2512 = vmatmul.msk.bf16.gmra.mxu2 %vm349_vm0, %v2236_v8 }
 0x76c   : > { %v2299_v10 = vpop.f32.mrf.mxu2 }
 0x76d   : > { %v2300_v43 = vadd.f32 %v4195_v0, %v2299_v10 }
 0x76f   : > { %2329 = vst.msk [vmem:[%s4204_s18 + $0x38] sm:$0xff] %vm349_vm0, %v2300_v43 }
 0x77b   : > { %v2302_v63 = vpop.f32.mrf.mxu2 }
 0x77c   : > { %v2303_v9 = vadd.f32 %v4195_v0, %v2302_v63 }
 0x77e   : > { %2330 = vst.msk [vmem:[%s4204_s18 + $0x40] sm:$0xff] %vm349_vm0, %v2303_v9 }
 0x783   : > { %v2304_v44 = vpop.f32.mrf.mxu2 }
 0x784   : > { %v2305_v31 = vadd.f32 %v4195_v0, %v2304_v44 }
 0x786   : > { %2331 = vst.msk [vmem:[%s4204_s18 + $0x48] sm:$0xff] %vm349_vm0, %v2305_v31 }
 0x7ae   : > { %v2307_v22 = vpop.f32.mrf.mxu2 }
 0x7af   : > { %v2308_v49 = vadd.f32 %v4195_v0, %v2307_v22 }
 0x7b1   : > { %2332 = vst.msk [vmem:[%s4204_s18 + $0x50] sm:$0xff] %vm349_vm0, %v2308_v49 }
 0x7b6   : > { %v2309_v32 = vpop.f32.mrf.mxu2 }
 0x7b7   : > { %v2310_v53 = vadd.f32 %v4195_v0, %v2309_v32 }
 0x7b9   : > { %2333 = vst.msk [vmem:[%s4204_s18 + $0x58] sm:$0xff] %vm349_vm0, %v2310_v53 }
 0x7da   : > { %v2312_v52 = vpop.f32.mrf.mxu2 }
 0x7db   : > { %v2313_v28 = vadd.f32 %v4195_v0, %v2312_v52 }
 0x7dd   : > { %2334 = vst.msk [vmem:[%s4204_s18 + $0x60] sm:$0xff] %vm349_vm0, %v2313_v28 }
 0x7e2   : > { %v2314_v45 = vpop.f32.mrf.mxu2 }
 0x7e3   : > { %v2315_v37 = vadd.f32 %v4195_v0, %v2314_v45 }
 0x7e5   : > { %2335 = vst.msk [vmem:[%s4204_s18 + $0x68] sm:$0xff] %vm349_vm0, %v2315_v37 }
 0x7eb   : > { %v2317_v24 = vpop.f32.mrf.mxu2 }
 0x7ec   : > { %v2318_v40 = vadd.f32 %v4195_v0, %v2317_v24 }
 0x7ee   : > { %2336 = vst.msk [vmem:[%s4204_s18 + $0x70] sm:$0xff] %vm349_vm0, %v2318_v40 }
 0x7f3   : > { %v2319_v33 = vpop.f32.mrf.mxu2 }
 0x7f4   : > { %v2320_v54 = vadd.f32 %v4195_v0, %v2319_v33 }
 0x7f6   : > { %2337 = vst.msk [vmem:[%s4204_s18 + $0x78] sm:$0xff] %vm349_vm0, %v2320_v54 }
 0x7f7 PF: > { %s17_s21 = sadd.s32 1, %s2878_s21  }
 0x7f8   : > { %p14_p7 = scmp.ge.s32.totalorder %s17_s21, 4  }
 0x7fa   :  { %16 = sbr.rel (!%p14_p7) target bundleno = 1 (0x1), region = 82 }
 0x7ff   :  { %2360 = vsyncpa [#allocation3], 1 }
 0x800   :  { %2362 = vsyncpa [#allocation3 + $0x1], 1 }

</bundles_post_ra>
